<compile_context>
chip_gen: v6e
topology: v6e:2x2x1
jax: 0.10.0
libtpu: 0.0.40
codegen_flags: <defaults>
</compile_context>

<pallas_src>
import jax
import jax.numpy as jnp
import numpy as np
from jax.experimental import pallas as pl
from jax.experimental.pallas import tpu as pltpu


# ----------------------------------------------------------------------------
# Pallas kernel: 2-layer LSTM recurrence (interleaved) + linear head on the
# final layer-1 hidden state.
# ----------------------------------------------------------------------------
def _lstm_predictor_kernel(
    x_ref,       # (S, Bblk, IN)  time-major input block
    wih0_ref,    # (IN, 4H)  layer-0 input weights  (transposed)
    whh0_ref,    # (H, 4H)   layer-0 hidden weights (transposed)
    b0_ref,      # (1, 4H)   layer-0 bias (b_ih + b_hh)
    wih1_ref,    # (H, 4H)   layer-1 input weights  (transposed)
    whh1_ref,    # (H, 4H)   layer-1 hidden weights (transposed)
    b1_ref,      # (1, 4H)   layer-1 bias (b_ih + b_hh)
    wout_ref,    # (H, OUT)  linear head weight (transposed)
    bout_ref,    # (1, OUT)  linear head bias
    out_ref,     # (Bblk, OUT)
):
    S, B, IN = x_ref.shape
    H = whh0_ref.shape[0]

    # ---- hoisted layer-0 input projection: one (S*B, IN)@(IN, 4H) push ----
    # Bias is NOT folded here so the per-step add order matches the reference
    # formula ((x@Wih + h@Whh) + b) bit-for-bit.
    x2d = x_ref[...].reshape(S * B, IN)            # layout no-op (B mult. of 8)
    p0 = jnp.dot(x2d, wih0_ref[...], preferred_element_type=jnp.float32)

    # Hoist weight loads and bias broadcasts out of the unrolled loop
    # (JAX does not CSE broadcast_in_dim).
    whh0 = whh0_ref[...]
    wih1 = wih1_ref[...]
    whh1 = whh1_ref[...]
    b0 = jnp.broadcast_to(b0_ref[...], (B, 4 * H))
    b1 = jnp.broadcast_to(b1_ref[...], (B, 4 * H))

    def activate(gates, c):
        # Full-4H-lane activations: 1 sigmoid + 1 tanh EUP push per cell,
        # sliced afterwards (instead of 4 pushes on 32-lane fragments).
        sig = jax.nn.sigmoid(gates)
        tnh = jnp.tanh(gates)
        i_g = sig[:, 0 * H:1 * H]
        f_g = sig[:, 1 * H:2 * H]
        g_g = tnh[:, 2 * H:3 * H]
        o_g = sig[:, 3 * H:4 * H]
        c_new = f_g * c + i_g * g_g
        h_new = o_g * jnp.tanh(c_new)
        return h_new, c_new

    h0 = jnp.zeros((B, H), jnp.float32)
    c0 = jnp.zeros((B, H), jnp.float32)
    h1 = jnp.zeros((B, H), jnp.float32)
    c1 = jnp.zeros((B, H), jnp.float32)

    # ---- interleaved, statically unrolled recurrences ----
    # Layer-0 step t+1 depends only on h0_t (not on layer 1), so its recurrent
    # matmul can overlap layer-1 step t's work in the unrolled schedule.
    for t in range(S):
        gates0 = (p0[t * B:(t + 1) * B, :]
                  + jnp.dot(h0, whh0, preferred_element_type=jnp.float32)) + b0
        h0, c0 = activate(gates0, c0)
        gates1 = (jnp.dot(h0, wih1, preferred_element_type=jnp.float32)
                  + jnp.dot(h1, whh1, preferred_element_type=jnp.float32)) + b1
        h1, c1 = activate(gates1, c1)

    # ---- linear head on the final layer-1 hidden state ----
    # (B, H)@(H, OUT=1) is a degenerate MXU push but it runs once per grid step
    # after the whole 2xS recurrence; kept as a dot for exact reference match.
    out_ref[...] = (
        jnp.dot(h1, wout_ref[...], preferred_element_type=jnp.float32)
        + bout_ref[...]
    )


# ----------------------------------------------------------------------------
# Wrapper (glue: batch padding, tiling policy, layout, pallas_call)
# ----------------------------------------------------------------------------
def _round_up(a, m):
    return ((a + m - 1) // m) * m


def time_series_predictor_forward(x, params, *, max_batch_block=128):
    """x: (batch, seq, input_size) float32 — matches torch batch_first input."""
    B, S, IN = x.shape
    OUT = params["wout_t"].shape[1]

    # ---- batch tiling policy ----
    # Rows per grid step: as wide as possible (up to 128 MXU rows) so the
    # serial 2xS recurrence is amortised over many batch rows and the serial
    # grid trip count (~0.35us/step) shrinks.  If the padded batch is big
    # enough, keep >=2 grid steps so ("parallel",) semantics can shard the
    # grid across both TensorCores on v7x.
    Bp = _round_up(B, 8)
    blk = min(max_batch_block, Bp)
    if Bp // blk < 2 and Bp >= 16:
        blk = _round_up((Bp + 1) // 2, 8)
    Bp = _round_up(Bp, blk)

    # Padded batch rows run garbage (sigmoid(bias) etc.) through the
    # recurrence; they are sliced off below and never read.
    xp = x.astype(jnp.float32)
    if Bp != B:
        xp = jnp.pad(xp, ((0, Bp - B), (0, 0), (0, 0)))
    # Time-major layout for the (tiny) input so the hoisted projection yields
    # contiguous, tile-aligned per-step slices inside the kernel.
    x_tm = jnp.transpose(xp, (1, 0, 2))             # (S, Bp, IN)

    def full_spec(arr):
        nd = arr.ndim
        return pl.BlockSpec(arr.shape, lambda b: (0,) * nd)

    out = pl.pallas_call(
        _lstm_predictor_kernel,
        out_shape=jax.ShapeDtypeStruct((Bp, OUT), jnp.float32),
        grid=(Bp // blk,),
        in_specs=[
            pl.BlockSpec((S, blk, IN), lambda b: (0, b, 0)),
            full_spec(params["wih0_t"]), full_spec(params["whh0_t"]),
            full_spec(params["b0"]),
            full_spec(params["wih1_t"]), full_spec(params["whh1_t"]),
            full_spec(params["b1"]),
            full_spec(params["wout_t"]), full_spec(params["bout"]),
        ],
        out_specs=pl.BlockSpec((blk, OUT), lambda b: (b, 0)),
        # Batch blocks are independent -> shards across TensorCores on v7x;
        # harmless serial loop on v5e/v6e.
        compiler_params=pltpu.CompilerParams(
            dimension_semantics=("parallel",)),
    )(
        x_tm,
        params["wih0_t"], params["whh0_t"], params["b0"],
        params["wih1_t"], params["whh1_t"], params["b1"],
        params["wout_t"], params["bout"],
    )
    out = out[:B]
    # torch: self.linear(hidden[-1]).squeeze(1)
    return out[:, 0] if OUT == 1 else out


# ----------------------------------------------------------------------------
# Pure-JAX reference (PyTorch LSTM-forward math) for correctness checking
# ----------------------------------------------------------------------------
def _reference_forward(x, params):
    B, S, _ = x.shape
    H = params["whh0_t"].shape[0]

    def run_layer(inp, wih_t, whh_t, b):
        h = jnp.zeros((B, H), jnp.float32)
        c = jnp.zeros((B, H), jnp.float32)
        outs = []
        for t in range(S):
            gates = inp[:, t, :] @ wih_t + h @ whh_t + b
            i_g = jax.nn.sigmoid(gates[:, :H])
            f_g = jax.nn.sigmoid(gates[:, H:2 * H])
            g_g = jnp.tanh(gates[:, 2 * H:3 * H])
            o_g = jax.nn.sigmoid(gates[:, 3 * H:])
            c = f_g * c + i_g * g_g
            h = o_g * jnp.tanh(c)
            outs.append(h)
        return jnp.stack(outs, axis=1), h

    seq0, _ = run_layer(x, params["wih0_t"], params["whh0_t"], params["b0"])
    _, h1 = run_layer(seq0, params["wih1_t"], params["whh1_t"], params["b1"])
    out = h1 @ params["wout_t"] + params["bout"]
    return out[:, 0] if out.shape[1] == 1 else out


# ----------------------------------------------------------------------------
# Deterministic parameter init (PyTorch-style uniform(-1/sqrt(H), 1/sqrt(H)))
# ----------------------------------------------------------------------------
def make_params(key, input_size, hidden, out_features):
    H = hidden
    keys = jax.random.split(key, 10)
    k = 1.0 / np.sqrt(H)

    def u(kk, shape):
        return jax.random.uniform(kk, shape, jnp.float32, minval=-k, maxval=k)

    wih0 = u(keys[0], (4 * H, input_size))
    whh0 = u(keys[1], (4 * H, H))
    bih0 = u(keys[2], (4 * H,))
    bhh0 = u(keys[3], (4 * H,))
    wih1 = u(keys[4], (4 * H, H))
    whh1 = u(keys[5], (4 * H, H))
    bih1 = u(keys[6], (4 * H,))
    bhh1 = u(keys[7], (4 * H,))

    wout = jax.random.uniform(keys[8], (out_features, H), jnp.float32,
                              minval=-k, maxval=k)
    bout = jax.random.uniform(keys[9], (out_features,), jnp.float32,
                              minval=-k, maxval=k)

    return {
        "wih0_t": wih0.T, "whh0_t": whh0.T, "b0": (bih0 + bhh0)[None, :],
        "wih1_t": wih1.T, "whh1_t": whh1.T, "b1": (bih1 + bhh1)[None, :],
        "wout_t": wout.T, "bout": bout[None, :],
    }


if __name__ == "__main__":
    S, IN, H, OUT = 8, 4, 32, 1

    key = jax.random.PRNGKey(0)
    key_x, key_x2, key_p = jax.random.split(key, 3)
    params = make_params(key_p, IN, H, OUT)

    # Small batch (single grid step).
    B = 4
    x = jax.random.normal(key_x, (B, S, IN), jnp.float32)
    y = jax.block_until_ready(time_series_predictor_forward(x, params))
    y_ref = jax.block_until_ready(_reference_forward(x, params))
    np.testing.assert_allclose(np.asarray(y), np.asarray(y_ref),
                               rtol=1e-5, atol=1e-5)
    assert y.shape == (B,)

    # Larger, non-multiple batch: exercises padding, the >=2-step grid path
    # (megacore shardable) and the wide batch_block.
    B2 = 20
    x2 = jax.random.normal(key_x2, (B2, S, IN), jnp.float32)
    y2 = jax.block_until_ready(time_series_predictor_forward(x2, params))
    y2_ref = jax.block_until_ready(_reference_forward(x2, params))
    np.testing.assert_allclose(np.asarray(y2), np.asarray(y2_ref),
                               rtol=1e-5, atol=1e-5)
    assert y2.shape == (B2,)

    print("KERNEL_OK")
</pallas_src>

<mosaic_0001>
module attributes {stable_mosaic.version = 11 : i64} {
  func.func @_lstm_predictor_kernel(%arg0: i32, %arg1: memref<8x8x4xf32, #tpu.memory_space<vmem>>, %arg2: memref<4x128xf32, #tpu.memory_space<vmem>>, %arg3: memref<32x128xf32, #tpu.memory_space<vmem>>, %arg4: memref<1x128xf32, #tpu.memory_space<vmem>>, %arg5: memref<32x128xf32, #tpu.memory_space<vmem>>, %arg6: memref<32x128xf32, #tpu.memory_space<vmem>>, %arg7: memref<1x128xf32, #tpu.memory_space<vmem>>, %arg8: memref<32x1xf32, #tpu.memory_space<vmem>>, %arg9: memref<1x1xf32, #tpu.memory_space<vmem>>, %arg10: memref<8x1xf32, #tpu.memory_space<vmem>>) attributes {dimension_semantics = [#tpu.dimension_semantics<parallel>], iteration_bounds = array<i64: 1>, scalar_prefetch = 0 : i64, scratch_operands = 0 : i64, tpu.core_type = #tpu.core_type<tc>, window_params = [{transform_indices = @transform_0, window_bounds = array<i64: 8, 8, 4>}, {pipeline_mode = #tpu.pipeline_mode<synchronous>, transform_indices = @transform_1, window_bounds = array<i64: 4, 128>}, {pipeline_mode = #tpu.pipeline_mode<synchronous>, transform_indices = @transform_2, window_bounds = array<i64: 32, 128>}, {pipeline_mode = #tpu.pipeline_mode<synchronous>, transform_indices = @transform_3, window_bounds = array<i64: 1, 128>}, {pipeline_mode = #tpu.pipeline_mode<synchronous>, transform_indices = @transform_4, window_bounds = array<i64: 32, 128>}, {pipeline_mode = #tpu.pipeline_mode<synchronous>, transform_indices = @transform_5, window_bounds = array<i64: 32, 128>}, {pipeline_mode = #tpu.pipeline_mode<synchronous>, transform_indices = @transform_6, window_bounds = array<i64: 1, 128>}, {pipeline_mode = #tpu.pipeline_mode<synchronous>, transform_indices = @transform_7, window_bounds = array<i64: 32, 1>}, {pipeline_mode = #tpu.pipeline_mode<synchronous>, transform_indices = @transform_8, window_bounds = array<i64: 1, 1>}, {transform_indices = @transform_9, window_bounds = array<i64: 8, 1>}]} {
    %c0 = arith.constant 0 : index
    %c0_0 = arith.constant 0 : index
    %c0_1 = arith.constant 0 : index
    %0 = vector.load %arg1[%c0, %c0_0, %c0_1] : memref<8x8x4xf32, #tpu.memory_space<vmem>>, vector<8x8x4xf32>
    %1 = vector.shape_cast %0 : vector<8x8x4xf32> to vector<64x4xf32>
    %c0_2 = arith.constant 0 : index
    %c0_3 = arith.constant 0 : index
    %2 = vector.load %arg2[%c0_2, %c0_3] : memref<4x128xf32, #tpu.memory_space<vmem>>, vector<4x128xf32>
    %cst = arith.constant dense<0.000000e+00> : vector<64x128xf32>
    %3 = tpu.matmul %1, %2, %cst {dimension_numbers = #tpu.dot_dimension_numbers<[1], [0], [0], [1], [0, 0, 1, 1], [], []>} : vector<64x4xf32>, vector<4x128xf32>, vector<64x128xf32> -> vector<64x128xf32>
    %c0_4 = arith.constant 0 : index
    %c0_5 = arith.constant 0 : index
    %4 = vector.load %arg3[%c0_4, %c0_5] : memref<32x128xf32, #tpu.memory_space<vmem>>, vector<32x128xf32>
    %c0_6 = arith.constant 0 : index
    %c0_7 = arith.constant 0 : index
    %5 = vector.load %arg5[%c0_6, %c0_7] : memref<32x128xf32, #tpu.memory_space<vmem>>, vector<32x128xf32>
    %c0_8 = arith.constant 0 : index
    %c0_9 = arith.constant 0 : index
    %6 = vector.load %arg6[%c0_8, %c0_9] : memref<32x128xf32, #tpu.memory_space<vmem>>, vector<32x128xf32>
    %c0_10 = arith.constant 0 : index
    %c0_11 = arith.constant 0 : index
    %7 = vector.load %arg4[%c0_10, %c0_11] : memref<1x128xf32, #tpu.memory_space<vmem>>, vector<1x128xf32>
    %8 = vector.shape_cast %7 : vector<1x128xf32> to vector<1x128xf32>
    %9 = vector.broadcast %8 : vector<1x128xf32> to vector<8x128xf32>
    %c0_12 = arith.constant 0 : index
    %c0_13 = arith.constant 0 : index
    %10 = vector.load %arg7[%c0_12, %c0_13] : memref<1x128xf32, #tpu.memory_space<vmem>>, vector<1x128xf32>
    %11 = vector.shape_cast %10 : vector<1x128xf32> to vector<1x128xf32>
    %12 = vector.broadcast %11 : vector<1x128xf32> to vector<8x128xf32>
    %cst_14 = arith.constant 0.000000e+00 : f32
    %13 = vector.broadcast %cst_14 : f32 to vector<8x32xf32>
    %cst_15 = arith.constant 0.000000e+00 : f32
    %14 = vector.broadcast %cst_15 : f32 to vector<8x32xf32>
    %cst_16 = arith.constant 0.000000e+00 : f32
    %15 = vector.broadcast %cst_16 : f32 to vector<8x32xf32>
    %cst_17 = arith.constant 0.000000e+00 : f32
    %16 = vector.broadcast %cst_17 : f32 to vector<8x32xf32>
    %17 = vector.extract_strided_slice %3 {offsets = [0, 0], sizes = [8, 128], strides = [1, 1]} : vector<64x128xf32> to vector<8x128xf32>
    %cst_18 = arith.constant dense<0.000000e+00> : vector<8x128xf32>
    %18 = tpu.matmul %13, %4, %cst_18 {dimension_numbers = #tpu.dot_dimension_numbers<[1], [0], [0], [1], [0, 0, 1, 1], [], []>} : vector<8x32xf32>, vector<32x128xf32>, vector<8x128xf32> -> vector<8x128xf32>
    %19 = arith.addf %17, %18 : vector<8x128xf32>
    %20 = arith.addf %19, %9 : vector<8x128xf32>
    %21 = arith.negf %20 : vector<8x128xf32>
    %22 = math.exp %21 : vector<8x128xf32>
    %cst_19 = arith.constant 1.000000e+00 : f32
    %23 = vector.broadcast %cst_19 : f32 to vector<8x128xf32>
    %24 = arith.addf %23, %22 : vector<8x128xf32>
    %25 = arith.divf %23, %24 : vector<8x128xf32>
    %26 = math.tanh %20 : vector<8x128xf32>
    %27 = vector.extract_strided_slice %25 {offsets = [0, 0], sizes = [8, 32], strides = [1, 1]} : vector<8x128xf32> to vector<8x32xf32>
    %28 = vector.extract_strided_slice %25 {offsets = [0, 32], sizes = [8, 32], strides = [1, 1]} : vector<8x128xf32> to vector<8x32xf32>
    %29 = vector.extract_strided_slice %26 {offsets = [0, 64], sizes = [8, 32], strides = [1, 1]} : vector<8x128xf32> to vector<8x32xf32>
    %30 = vector.extract_strided_slice %25 {offsets = [0, 96], sizes = [8, 32], strides = [1, 1]} : vector<8x128xf32> to vector<8x32xf32>
    %31 = arith.mulf %28, %14 : vector<8x32xf32>
    %32 = arith.mulf %27, %29 : vector<8x32xf32>
    %33 = arith.addf %31, %32 : vector<8x32xf32>
    %34 = math.tanh %33 : vector<8x32xf32>
    %35 = arith.mulf %30, %34 : vector<8x32xf32>
    %cst_20 = arith.constant dense<0.000000e+00> : vector<8x128xf32>
    %36 = tpu.matmul %35, %5, %cst_20 {dimension_numbers = #tpu.dot_dimension_numbers<[1], [0], [0], [1], [0, 0, 1, 1], [], []>} : vector<8x32xf32>, vector<32x128xf32>, vector<8x128xf32> -> vector<8x128xf32>
    %cst_21 = arith.constant dense<0.000000e+00> : vector<8x128xf32>
    %37 = tpu.matmul %15, %6, %cst_21 {dimension_numbers = #tpu.dot_dimension_numbers<[1], [0], [0], [1], [0, 0, 1, 1], [], []>} : vector<8x32xf32>, vector<32x128xf32>, vector<8x128xf32> -> vector<8x128xf32>
    %38 = arith.addf %36, %37 : vector<8x128xf32>
    %39 = arith.addf %38, %12 : vector<8x128xf32>
    %40 = arith.negf %39 : vector<8x128xf32>
    %41 = math.exp %40 : vector<8x128xf32>
    %cst_22 = arith.constant 1.000000e+00 : f32
    %42 = vector.broadcast %cst_22 : f32 to vector<8x128xf32>
    %43 = arith.addf %42, %41 : vector<8x128xf32>
    %44 = arith.divf %42, %43 : vector<8x128xf32>
    %45 = math.tanh %39 : vector<8x128xf32>
    %46 = vector.extract_strided_slice %44 {offsets = [0, 0], sizes = [8, 32], strides = [1, 1]} : vector<8x128xf32> to vector<8x32xf32>
    %47 = vector.extract_strided_slice %44 {offsets = [0, 32], sizes = [8, 32], strides = [1, 1]} : vector<8x128xf32> to vector<8x32xf32>
    %48 = vector.extract_strided_slice %45 {offsets = [0, 64], sizes = [8, 32], strides = [1, 1]} : vector<8x128xf32> to vector<8x32xf32>
    %49 = vector.extract_strided_slice %44 {offsets = [0, 96], sizes = [8, 32], strides = [1, 1]} : vector<8x128xf32> to vector<8x32xf32>
    %50 = arith.mulf %47, %16 : vector<8x32xf32>
    %51 = arith.mulf %46, %48 : vector<8x32xf32>
    %52 = arith.addf %50, %51 : vector<8x32xf32>
    %53 = math.tanh %52 : vector<8x32xf32>
    %54 = arith.mulf %49, %53 : vector<8x32xf32>
    %55 = vector.extract_strided_slice %3 {offsets = [8, 0], sizes = [8, 128], strides = [1, 1]} : vector<64x128xf32> to vector<8x128xf32>
    %cst_23 = arith.constant dense<0.000000e+00> : vector<8x128xf32>
    %56 = tpu.matmul %35, %4, %cst_23 {dimension_numbers = #tpu.dot_dimension_numbers<[1], [0], [0], [1], [0, 0, 1, 1], [], []>} : vector<8x32xf32>, vector<32x128xf32>, vector<8x128xf32> -> vector<8x128xf32>
    %57 = arith.addf %55, %56 : vector<8x128xf32>
    %58 = arith.addf %57, %9 : vector<8x128xf32>
    %59 = arith.negf %58 : vector<8x128xf32>
    %60 = math.exp %59 : vector<8x128xf32>
    %cst_24 = arith.constant 1.000000e+00 : f32
    %61 = vector.broadcast %cst_24 : f32 to vector<8x128xf32>
    %62 = arith.addf %61, %60 : vector<8x128xf32>
    %63 = arith.divf %61, %62 : vector<8x128xf32>
    %64 = math.tanh %58 : vector<8x128xf32>
    %65 = vector.extract_strided_slice %63 {offsets = [0, 0], sizes = [8, 32], strides = [1, 1]} : vector<8x128xf32> to vector<8x32xf32>
    %66 = vector.extract_strided_slice %63 {offsets = [0, 32], sizes = [8, 32], strides = [1, 1]} : vector<8x128xf32> to vector<8x32xf32>
    %67 = vector.extract_strided_slice %64 {offsets = [0, 64], sizes = [8, 32], strides = [1, 1]} : vector<8x128xf32> to vector<8x32xf32>
    %68 = vector.extract_strided_slice %63 {offsets = [0, 96], sizes = [8, 32], strides = [1, 1]} : vector<8x128xf32> to vector<8x32xf32>
    %69 = arith.mulf %66, %33 : vector<8x32xf32>
    %70 = arith.mulf %65, %67 : vector<8x32xf32>
    %71 = arith.addf %69, %70 : vector<8x32xf32>
    %72 = math.tanh %71 : vector<8x32xf32>
    %73 = arith.mulf %68, %72 : vector<8x32xf32>
    %cst_25 = arith.constant dense<0.000000e+00> : vector<8x128xf32>
    %74 = tpu.matmul %73, %5, %cst_25 {dimension_numbers = #tpu.dot_dimension_numbers<[1], [0], [0], [1], [0, 0, 1, 1], [], []>} : vector<8x32xf32>, vector<32x128xf32>, vector<8x128xf32> -> vector<8x128xf32>
    %cst_26 = arith.constant dense<0.000000e+00> : vector<8x128xf32>
    %75 = tpu.matmul %54, %6, %cst_26 {dimension_numbers = #tpu.dot_dimension_numbers<[1], [0], [0], [1], [0, 0, 1, 1], [], []>} : vector<8x32xf32>, vector<32x128xf32>, vector<8x128xf32> -> vector<8x128xf32>
    %76 = arith.addf %74, %75 : vector<8x128xf32>
    %77 = arith.addf %76, %12 : vector<8x128xf32>
    %78 = arith.negf %77 : vector<8x128xf32>
    %79 = math.exp %78 : vector<8x128xf32>
    %cst_27 = arith.constant 1.000000e+00 : f32
    %80 = vector.broadcast %cst_27 : f32 to vector<8x128xf32>
    %81 = arith.addf %80, %79 : vector<8x128xf32>
    %82 = arith.divf %80, %81 : vector<8x128xf32>
    %83 = math.tanh %77 : vector<8x128xf32>
    %84 = vector.extract_strided_slice %82 {offsets = [0, 0], sizes = [8, 32], strides = [1, 1]} : vector<8x128xf32> to vector<8x32xf32>
    %85 = vector.extract_strided_slice %82 {offsets = [0, 32], sizes = [8, 32], strides = [1, 1]} : vector<8x128xf32> to vector<8x32xf32>
    %86 = vector.extract_strided_slice %83 {offsets = [0, 64], sizes = [8, 32], strides = [1, 1]} : vector<8x128xf32> to vector<8x32xf32>
    %87 = vector.extract_strided_slice %82 {offsets = [0, 96], sizes = [8, 32], strides = [1, 1]} : vector<8x128xf32> to vector<8x32xf32>
    %88 = arith.mulf %85, %52 : vector<8x32xf32>
    %89 = arith.mulf %84, %86 : vector<8x32xf32>
    %90 = arith.addf %88, %89 : vector<8x32xf32>
    %91 = math.tanh %90 : vector<8x32xf32>
    %92 = arith.mulf %87, %91 : vector<8x32xf32>
    %93 = vector.extract_strided_slice %3 {offsets = [16, 0], sizes = [8, 128], strides = [1, 1]} : vector<64x128xf32> to vector<8x128xf32>
    %cst_28 = arith.constant dense<0.000000e+00> : vector<8x128xf32>
    %94 = tpu.matmul %73, %4, %cst_28 {dimension_numbers = #tpu.dot_dimension_numbers<[1], [0], [0], [1], [0, 0, 1, 1], [], []>} : vector<8x32xf32>, vector<32x128xf32>, vector<8x128xf32> -> vector<8x128xf32>
    %95 = arith.addf %93, %94 : vector<8x128xf32>
    %96 = arith.addf %95, %9 : vector<8x128xf32>
    %97 = arith.negf %96 : vector<8x128xf32>
    %98 = math.exp %97 : vector<8x128xf32>
    %cst_29 = arith.constant 1.000000e+00 : f32
    %99 = vector.broadcast %cst_29 : f32 to vector<8x128xf32>
    %100 = arith.addf %99, %98 : vector<8x128xf32>
    %101 = arith.divf %99, %100 : vector<8x128xf32>
    %102 = math.tanh %96 : vector<8x128xf32>
    %103 = vector.extract_strided_slice %101 {offsets = [0, 0], sizes = [8, 32], strides = [1, 1]} : vector<8x128xf32> to vector<8x32xf32>
    %104 = vector.extract_strided_slice %101 {offsets = [0, 32], sizes = [8, 32], strides = [1, 1]} : vector<8x128xf32> to vector<8x32xf32>
    %105 = vector.extract_strided_slice %102 {offsets = [0, 64], sizes = [8, 32], strides = [1, 1]} : vector<8x128xf32> to vector<8x32xf32>
    %106 = vector.extract_strided_slice %101 {offsets = [0, 96], sizes = [8, 32], strides = [1, 1]} : vector<8x128xf32> to vector<8x32xf32>
    %107 = arith.mulf %104, %71 : vector<8x32xf32>
    %108 = arith.mulf %103, %105 : vector<8x32xf32>
    %109 = arith.addf %107, %108 : vector<8x32xf32>
    %110 = math.tanh %109 : vector<8x32xf32>
    %111 = arith.mulf %106, %110 : vector<8x32xf32>
    %cst_30 = arith.constant dense<0.000000e+00> : vector<8x128xf32>
    %112 = tpu.matmul %111, %5, %cst_30 {dimension_numbers = #tpu.dot_dimension_numbers<[1], [0], [0], [1], [0, 0, 1, 1], [], []>} : vector<8x32xf32>, vector<32x128xf32>, vector<8x128xf32> -> vector<8x128xf32>
    %cst_31 = arith.constant dense<0.000000e+00> : vector<8x128xf32>
    %113 = tpu.matmul %92, %6, %cst_31 {dimension_numbers = #tpu.dot_dimension_numbers<[1], [0], [0], [1], [0, 0, 1, 1], [], []>} : vector<8x32xf32>, vector<32x128xf32>, vector<8x128xf32> -> vector<8x128xf32>
    %114 = arith.addf %112, %113 : vector<8x128xf32>
    %115 = arith.addf %114, %12 : vector<8x128xf32>
    %116 = arith.negf %115 : vector<8x128xf32>
    %117 = math.exp %116 : vector<8x128xf32>
    %cst_32 = arith.constant 1.000000e+00 : f32
    %118 = vector.broadcast %cst_32 : f32 to vector<8x128xf32>
    %119 = arith.addf %118, %117 : vector<8x128xf32>
    %120 = arith.divf %118, %119 : vector<8x128xf32>
    %121 = math.tanh %115 : vector<8x128xf32>
    %122 = vector.extract_strided_slice %120 {offsets = [0, 0], sizes = [8, 32], strides = [1, 1]} : vector<8x128xf32> to vector<8x32xf32>
    %123 = vector.extract_strided_slice %120 {offsets = [0, 32], sizes = [8, 32], strides = [1, 1]} : vector<8x128xf32> to vector<8x32xf32>
    %124 = vector.extract_strided_slice %121 {offsets = [0, 64], sizes = [8, 32], strides = [1, 1]} : vector<8x128xf32> to vector<8x32xf32>
    %125 = vector.extract_strided_slice %120 {offsets = [0, 96], sizes = [8, 32], strides = [1, 1]} : vector<8x128xf32> to vector<8x32xf32>
    %126 = arith.mulf %123, %90 : vector<8x32xf32>
    %127 = arith.mulf %122, %124 : vector<8x32xf32>
    %128 = arith.addf %126, %127 : vector<8x32xf32>
    %129 = math.tanh %128 : vector<8x32xf32>
    %130 = arith.mulf %125, %129 : vector<8x32xf32>
    %131 = vector.extract_strided_slice %3 {offsets = [24, 0], sizes = [8, 128], strides = [1, 1]} : vector<64x128xf32> to vector<8x128xf32>
    %cst_33 = arith.constant dense<0.000000e+00> : vector<8x128xf32>
    %132 = tpu.matmul %111, %4, %cst_33 {dimension_numbers = #tpu.dot_dimension_numbers<[1], [0], [0], [1], [0, 0, 1, 1], [], []>} : vector<8x32xf32>, vector<32x128xf32>, vector<8x128xf32> -> vector<8x128xf32>
    %133 = arith.addf %131, %132 : vector<8x128xf32>
    %134 = arith.addf %133, %9 : vector<8x128xf32>
    %135 = arith.negf %134 : vector<8x128xf32>
    %136 = math.exp %135 : vector<8x128xf32>
    %cst_34 = arith.constant 1.000000e+00 : f32
    %137 = vector.broadcast %cst_34 : f32 to vector<8x128xf32>
    %138 = arith.addf %137, %136 : vector<8x128xf32>
    %139 = arith.divf %137, %138 : vector<8x128xf32>
    %140 = math.tanh %134 : vector<8x128xf32>
    %141 = vector.extract_strided_slice %139 {offsets = [0, 0], sizes = [8, 32], strides = [1, 1]} : vector<8x128xf32> to vector<8x32xf32>
    %142 = vector.extract_strided_slice %139 {offsets = [0, 32], sizes = [8, 32], strides = [1, 1]} : vector<8x128xf32> to vector<8x32xf32>
    %143 = vector.extract_strided_slice %140 {offsets = [0, 64], sizes = [8, 32], strides = [1, 1]} : vector<8x128xf32> to vector<8x32xf32>
    %144 = vector.extract_strided_slice %139 {offsets = [0, 96], sizes = [8, 32], strides = [1, 1]} : vector<8x128xf32> to vector<8x32xf32>
    %145 = arith.mulf %142, %109 : vector<8x32xf32>
    %146 = arith.mulf %141, %143 : vector<8x32xf32>
    %147 = arith.addf %145, %146 : vector<8x32xf32>
    %148 = math.tanh %147 : vector<8x32xf32>
    %149 = arith.mulf %144, %148 : vector<8x32xf32>
    %cst_35 = arith.constant dense<0.000000e+00> : vector<8x128xf32>
    %150 = tpu.matmul %149, %5, %cst_35 {dimension_numbers = #tpu.dot_dimension_numbers<[1], [0], [0], [1], [0, 0, 1, 1], [], []>} : vector<8x32xf32>, vector<32x128xf32>, vector<8x128xf32> -> vector<8x128xf32>
    %cst_36 = arith.constant dense<0.000000e+00> : vector<8x128xf32>
    %151 = tpu.matmul %130, %6, %cst_36 {dimension_numbers = #tpu.dot_dimension_numbers<[1], [0], [0], [1], [0, 0, 1, 1], [], []>} : vector<8x32xf32>, vector<32x128xf32>, vector<8x128xf32> -> vector<8x128xf32>
    %152 = arith.addf %150, %151 : vector<8x128xf32>
    %153 = arith.addf %152, %12 : vector<8x128xf32>
    %154 = arith.negf %153 : vector<8x128xf32>
    %155 = math.exp %154 : vector<8x128xf32>
    %cst_37 = arith.constant 1.000000e+00 : f32
    %156 = vector.broadcast %cst_37 : f32 to vector<8x128xf32>
    %157 = arith.addf %156, %155 : vector<8x128xf32>
    %158 = arith.divf %156, %157 : vector<8x128xf32>
    %159 = math.tanh %153 : vector<8x128xf32>
    %160 = vector.extract_strided_slice %158 {offsets = [0, 0], sizes = [8, 32], strides = [1, 1]} : vector<8x128xf32> to vector<8x32xf32>
    %161 = vector.extract_strided_slice %158 {offsets = [0, 32], sizes = [8, 32], strides = [1, 1]} : vector<8x128xf32> to vector<8x32xf32>
    %162 = vector.extract_strided_slice %159 {offsets = [0, 64], sizes = [8, 32], strides = [1, 1]} : vector<8x128xf32> to vector<8x32xf32>
    %163 = vector.extract_strided_slice %158 {offsets = [0, 96], sizes = [8, 32], strides = [1, 1]} : vector<8x128xf32> to vector<8x32xf32>
    %164 = arith.mulf %161, %128 : vector<8x32xf32>
    %165 = arith.mulf %160, %162 : vector<8x32xf32>
    %166 = arith.addf %164, %165 : vector<8x32xf32>
    %167 = math.tanh %166 : vector<8x32xf32>
    %168 = arith.mulf %163, %167 : vector<8x32xf32>
    %169 = vector.extract_strided_slice %3 {offsets = [32, 0], sizes = [8, 128], strides = [1, 1]} : vector<64x128xf32> to vector<8x128xf32>
    %cst_38 = arith.constant dense<0.000000e+00> : vector<8x128xf32>
    %170 = tpu.matmul %149, %4, %cst_38 {dimension_numbers = #tpu.dot_dimension_numbers<[1], [0], [0], [1], [0, 0, 1, 1], [], []>} : vector<8x32xf32>, vector<32x128xf32>, vector<8x128xf32> -> vector<8x128xf32>
    %171 = arith.addf %169, %170 : vector<8x128xf32>
    %172 = arith.addf %171, %9 : vector<8x128xf32>
    %173 = arith.negf %172 : vector<8x128xf32>
    %174 = math.exp %173 : vector<8x128xf32>
    %cst_39 = arith.constant 1.000000e+00 : f32
    %175 = vector.broadcast %cst_39 : f32 to vector<8x128xf32>
    %176 = arith.addf %175, %174 : vector<8x128xf32>
    %177 = arith.divf %175, %176 : vector<8x128xf32>
    %178 = math.tanh %172 : vector<8x128xf32>
    %179 = vector.extract_strided_slice %177 {offsets = [0, 0], sizes = [8, 32], strides = [1, 1]} : vector<8x128xf32> to vector<8x32xf32>
    %180 = vector.extract_strided_slice %177 {offsets = [0, 32], sizes = [8, 32], strides = [1, 1]} : vector<8x128xf32> to vector<8x32xf32>
    %181 = vector.extract_strided_slice %178 {offsets = [0, 64], sizes = [8, 32], strides = [1, 1]} : vector<8x128xf32> to vector<8x32xf32>
    %182 = vector.extract_strided_slice %177 {offsets = [0, 96], sizes = [8, 32], strides = [1, 1]} : vector<8x128xf32> to vector<8x32xf32>
    %183 = arith.mulf %180, %147 : vector<8x32xf32>
    %184 = arith.mulf %179, %181 : vector<8x32xf32>
    %185 = arith.addf %183, %184 : vector<8x32xf32>
    %186 = math.tanh %185 : vector<8x32xf32>
    %187 = arith.mulf %182, %186 : vector<8x32xf32>
    %cst_40 = arith.constant dense<0.000000e+00> : vector<8x128xf32>
    %188 = tpu.matmul %187, %5, %cst_40 {dimension_numbers = #tpu.dot_dimension_numbers<[1], [0], [0], [1], [0, 0, 1, 1], [], []>} : vector<8x32xf32>, vector<32x128xf32>, vector<8x128xf32> -> vector<8x128xf32>
    %cst_41 = arith.constant dense<0.000000e+00> : vector<8x128xf32>
    %189 = tpu.matmul %168, %6, %cst_41 {dimension_numbers = #tpu.dot_dimension_numbers<[1], [0], [0], [1], [0, 0, 1, 1], [], []>} : vector<8x32xf32>, vector<32x128xf32>, vector<8x128xf32> -> vector<8x128xf32>
    %190 = arith.addf %188, %189 : vector<8x128xf32>
    %191 = arith.addf %190, %12 : vector<8x128xf32>
    %192 = arith.negf %191 : vector<8x128xf32>
    %193 = math.exp %192 : vector<8x128xf32>
    %cst_42 = arith.constant 1.000000e+00 : f32
    %194 = vector.broadcast %cst_42 : f32 to vector<8x128xf32>
    %195 = arith.addf %194, %193 : vector<8x128xf32>
    %196 = arith.divf %194, %195 : vector<8x128xf32>
    %197 = math.tanh %191 : vector<8x128xf32>
    %198 = vector.extract_strided_slice %196 {offsets = [0, 0], sizes = [8, 32], strides = [1, 1]} : vector<8x128xf32> to vector<8x32xf32>
    %199 = vector.extract_strided_slice %196 {offsets = [0, 32], sizes = [8, 32], strides = [1, 1]} : vector<8x128xf32> to vector<8x32xf32>
    %200 = vector.extract_strided_slice %197 {offsets = [0, 64], sizes = [8, 32], strides = [1, 1]} : vector<8x128xf32> to vector<8x32xf32>
    %201 = vector.extract_strided_slice %196 {offsets = [0, 96], sizes = [8, 32], strides = [1, 1]} : vector<8x128xf32> to vector<8x32xf32>
    %202 = arith.mulf %199, %166 : vector<8x32xf32>
    %203 = arith.mulf %198, %200 : vector<8x32xf32>
    %204 = arith.addf %202, %203 : vector<8x32xf32>
    %205 = math.tanh %204 : vector<8x32xf32>
    %206 = arith.mulf %201, %205 : vector<8x32xf32>
    %207 = vector.extract_strided_slice %3 {offsets = [40, 0], sizes = [8, 128], strides = [1, 1]} : vector<64x128xf32> to vector<8x128xf32>
    %cst_43 = arith.constant dense<0.000000e+00> : vector<8x128xf32>
    %208 = tpu.matmul %187, %4, %cst_43 {dimension_numbers = #tpu.dot_dimension_numbers<[1], [0], [0], [1], [0, 0, 1, 1], [], []>} : vector<8x32xf32>, vector<32x128xf32>, vector<8x128xf32> -> vector<8x128xf32>
    %209 = arith.addf %207, %208 : vector<8x128xf32>
    %210 = arith.addf %209, %9 : vector<8x128xf32>
    %211 = arith.negf %210 : vector<8x128xf32>
    %212 = math.exp %211 : vector<8x128xf32>
    %cst_44 = arith.constant 1.000000e+00 : f32
    %213 = vector.broadcast %cst_44 : f32 to vector<8x128xf32>
    %214 = arith.addf %213, %212 : vector<8x128xf32>
    %215 = arith.divf %213, %214 : vector<8x128xf32>
    %216 = math.tanh %210 : vector<8x128xf32>
    %217 = vector.extract_strided_slice %215 {offsets = [0, 0], sizes = [8, 32], strides = [1, 1]} : vector<8x128xf32> to vector<8x32xf32>
    %218 = vector.extract_strided_slice %215 {offsets = [0, 32], sizes = [8, 32], strides = [1, 1]} : vector<8x128xf32> to vector<8x32xf32>
    %219 = vector.extract_strided_slice %216 {offsets = [0, 64], sizes = [8, 32], strides = [1, 1]} : vector<8x128xf32> to vector<8x32xf32>
    %220 = vector.extract_strided_slice %215 {offsets = [0, 96], sizes = [8, 32], strides = [1, 1]} : vector<8x128xf32> to vector<8x32xf32>
    %221 = arith.mulf %218, %185 : vector<8x32xf32>
    %222 = arith.mulf %217, %219 : vector<8x32xf32>
    %223 = arith.addf %221, %222 : vector<8x32xf32>
    %224 = math.tanh %223 : vector<8x32xf32>
    %225 = arith.mulf %220, %224 : vector<8x32xf32>
    %cst_45 = arith.constant dense<0.000000e+00> : vector<8x128xf32>
    %226 = tpu.matmul %225, %5, %cst_45 {dimension_numbers = #tpu.dot_dimension_numbers<[1], [0], [0], [1], [0, 0, 1, 1], [], []>} : vector<8x32xf32>, vector<32x128xf32>, vector<8x128xf32> -> vector<8x128xf32>
    %cst_46 = arith.constant dense<0.000000e+00> : vector<8x128xf32>
    %227 = tpu.matmul %206, %6, %cst_46 {dimension_numbers = #tpu.dot_dimension_numbers<[1], [0], [0], [1], [0, 0, 1, 1], [], []>} : vector<8x32xf32>, vector<32x128xf32>, vector<8x128xf32> -> vector<8x128xf32>
    %228 = arith.addf %226, %227 : vector<8x128xf32>
    %229 = arith.addf %228, %12 : vector<8x128xf32>
    %230 = arith.negf %229 : vector<8x128xf32>
    %231 = math.exp %230 : vector<8x128xf32>
    %cst_47 = arith.constant 1.000000e+00 : f32
    %232 = vector.broadcast %cst_47 : f32 to vector<8x128xf32>
    %233 = arith.addf %232, %231 : vector<8x128xf32>
    %234 = arith.divf %232, %233 : vector<8x128xf32>
    %235 = math.tanh %229 : vector<8x128xf32>
    %236 = vector.extract_strided_slice %234 {offsets = [0, 0], sizes = [8, 32], strides = [1, 1]} : vector<8x128xf32> to vector<8x32xf32>
    %237 = vector.extract_strided_slice %234 {offsets = [0, 32], sizes = [8, 32], strides = [1, 1]} : vector<8x128xf32> to vector<8x32xf32>
    %238 = vector.extract_strided_slice %235 {offsets = [0, 64], sizes = [8, 32], strides = [1, 1]} : vector<8x128xf32> to vector<8x32xf32>
    %239 = vector.extract_strided_slice %234 {offsets = [0, 96], sizes = [8, 32], strides = [1, 1]} : vector<8x128xf32> to vector<8x32xf32>
    %240 = arith.mulf %237, %204 : vector<8x32xf32>
    %241 = arith.mulf %236, %238 : vector<8x32xf32>
    %242 = arith.addf %240, %241 : vector<8x32xf32>
    %243 = math.tanh %242 : vector<8x32xf32>
    %244 = arith.mulf %239, %243 : vector<8x32xf32>
    %245 = vector.extract_strided_slice %3 {offsets = [48, 0], sizes = [8, 128], strides = [1, 1]} : vector<64x128xf32> to vector<8x128xf32>
    %cst_48 = arith.constant dense<0.000000e+00> : vector<8x128xf32>
    %246 = tpu.matmul %225, %4, %cst_48 {dimension_numbers = #tpu.dot_dimension_numbers<[1], [0], [0], [1], [0, 0, 1, 1], [], []>} : vector<8x32xf32>, vector<32x128xf32>, vector<8x128xf32> -> vector<8x128xf32>
    %247 = arith.addf %245, %246 : vector<8x128xf32>
    %248 = arith.addf %247, %9 : vector<8x128xf32>
    %249 = arith.negf %248 : vector<8x128xf32>
    %250 = math.exp %249 : vector<8x128xf32>
    %cst_49 = arith.constant 1.000000e+00 : f32
    %251 = vector.broadcast %cst_49 : f32 to vector<8x128xf32>
    %252 = arith.addf %251, %250 : vector<8x128xf32>
    %253 = arith.divf %251, %252 : vector<8x128xf32>
    %254 = math.tanh %248 : vector<8x128xf32>
    %255 = vector.extract_strided_slice %253 {offsets = [0, 0], sizes = [8, 32], strides = [1, 1]} : vector<8x128xf32> to vector<8x32xf32>
    %256 = vector.extract_strided_slice %253 {offsets = [0, 32], sizes = [8, 32], strides = [1, 1]} : vector<8x128xf32> to vector<8x32xf32>
    %257 = vector.extract_strided_slice %254 {offsets = [0, 64], sizes = [8, 32], strides = [1, 1]} : vector<8x128xf32> to vector<8x32xf32>
    %258 = vector.extract_strided_slice %253 {offsets = [0, 96], sizes = [8, 32], strides = [1, 1]} : vector<8x128xf32> to vector<8x32xf32>
    %259 = arith.mulf %256, %223 : vector<8x32xf32>
    %260 = arith.mulf %255, %257 : vector<8x32xf32>
    %261 = arith.addf %259, %260 : vector<8x32xf32>
    %262 = math.tanh %261 : vector<8x32xf32>
    %263 = arith.mulf %258, %262 : vector<8x32xf32>
    %cst_50 = arith.constant dense<0.000000e+00> : vector<8x128xf32>
    %264 = tpu.matmul %263, %5, %cst_50 {dimension_numbers = #tpu.dot_dimension_numbers<[1], [0], [0], [1], [0, 0, 1, 1], [], []>} : vector<8x32xf32>, vector<32x128xf32>, vector<8x128xf32> -> vector<8x128xf32>
    %cst_51 = arith.constant dense<0.000000e+00> : vector<8x128xf32>
    %265 = tpu.matmul %244, %6, %cst_51 {dimension_numbers = #tpu.dot_dimension_numbers<[1], [0], [0], [1], [0, 0, 1, 1], [], []>} : vector<8x32xf32>, vector<32x128xf32>, vector<8x128xf32> -> vector<8x128xf32>
    %266 = arith.addf %264, %265 : vector<8x128xf32>
    %267 = arith.addf %266, %12 : vector<8x128xf32>
    %268 = arith.negf %267 : vector<8x128xf32>
    %269 = math.exp %268 : vector<8x128xf32>
    %cst_52 = arith.constant 1.000000e+00 : f32
    %270 = vector.broadcast %cst_52 : f32 to vector<8x128xf32>
    %271 = arith.addf %270, %269 : vector<8x128xf32>
    %272 = arith.divf %270, %271 : vector<8x128xf32>
    %273 = math.tanh %267 : vector<8x128xf32>
    %274 = vector.extract_strided_slice %272 {offsets = [0, 0], sizes = [8, 32], strides = [1, 1]} : vector<8x128xf32> to vector<8x32xf32>
    %275 = vector.extract_strided_slice %272 {offsets = [0, 32], sizes = [8, 32], strides = [1, 1]} : vector<8x128xf32> to vector<8x32xf32>
    %276 = vector.extract_strided_slice %273 {offsets = [0, 64], sizes = [8, 32], strides = [1, 1]} : vector<8x128xf32> to vector<8x32xf32>
    %277 = vector.extract_strided_slice %272 {offsets = [0, 96], sizes = [8, 32], strides = [1, 1]} : vector<8x128xf32> to vector<8x32xf32>
    %278 = arith.mulf %275, %242 : vector<8x32xf32>
    %279 = arith.mulf %274, %276 : vector<8x32xf32>
    %280 = arith.addf %278, %279 : vector<8x32xf32>
    %281 = math.tanh %280 : vector<8x32xf32>
    %282 = arith.mulf %277, %281 : vector<8x32xf32>
    %283 = vector.extract_strided_slice %3 {offsets = [56, 0], sizes = [8, 128], strides = [1, 1]} : vector<64x128xf32> to vector<8x128xf32>
    %cst_53 = arith.constant dense<0.000000e+00> : vector<8x128xf32>
    %284 = tpu.matmul %263, %4, %cst_53 {dimension_numbers = #tpu.dot_dimension_numbers<[1], [0], [0], [1], [0, 0, 1, 1], [], []>} : vector<8x32xf32>, vector<32x128xf32>, vector<8x128xf32> -> vector<8x128xf32>
    %285 = arith.addf %283, %284 : vector<8x128xf32>
    %286 = arith.addf %285, %9 : vector<8x128xf32>
    %287 = arith.negf %286 : vector<8x128xf32>
    %288 = math.exp %287 : vector<8x128xf32>
    %cst_54 = arith.constant 1.000000e+00 : f32
    %289 = vector.broadcast %cst_54 : f32 to vector<8x128xf32>
    %290 = arith.addf %289, %288 : vector<8x128xf32>
    %291 = arith.divf %289, %290 : vector<8x128xf32>
    %292 = math.tanh %286 : vector<8x128xf32>
    %293 = vector.extract_strided_slice %291 {offsets = [0, 0], sizes = [8, 32], strides = [1, 1]} : vector<8x128xf32> to vector<8x32xf32>
    %294 = vector.extract_strided_slice %291 {offsets = [0, 32], sizes = [8, 32], strides = [1, 1]} : vector<8x128xf32> to vector<8x32xf32>
    %295 = vector.extract_strided_slice %292 {offsets = [0, 64], sizes = [8, 32], strides = [1, 1]} : vector<8x128xf32> to vector<8x32xf32>
    %296 = vector.extract_strided_slice %291 {offsets = [0, 96], sizes = [8, 32], strides = [1, 1]} : vector<8x128xf32> to vector<8x32xf32>
    %297 = arith.mulf %294, %261 : vector<8x32xf32>
    %298 = arith.mulf %293, %295 : vector<8x32xf32>
    %299 = arith.addf %297, %298 : vector<8x32xf32>
    %300 = math.tanh %299 : vector<8x32xf32>
    %301 = arith.mulf %296, %300 : vector<8x32xf32>
    %cst_55 = arith.constant dense<0.000000e+00> : vector<8x128xf32>
    %302 = tpu.matmul %301, %5, %cst_55 {dimension_numbers = #tpu.dot_dimension_numbers<[1], [0], [0], [1], [0, 0, 1, 1], [], []>} : vector<8x32xf32>, vector<32x128xf32>, vector<8x128xf32> -> vector<8x128xf32>
    %cst_56 = arith.constant dense<0.000000e+00> : vector<8x128xf32>
    %303 = tpu.matmul %282, %6, %cst_56 {dimension_numbers = #tpu.dot_dimension_numbers<[1], [0], [0], [1], [0, 0, 1, 1], [], []>} : vector<8x32xf32>, vector<32x128xf32>, vector<8x128xf32> -> vector<8x128xf32>
    %304 = arith.addf %302, %303 : vector<8x128xf32>
    %305 = arith.addf %304, %12 : vector<8x128xf32>
    %306 = arith.negf %305 : vector<8x128xf32>
    %307 = math.exp %306 : vector<8x128xf32>
    %cst_57 = arith.constant 1.000000e+00 : f32
    %308 = vector.broadcast %cst_57 : f32 to vector<8x128xf32>
    %309 = arith.addf %308, %307 : vector<8x128xf32>
    %310 = arith.divf %308, %309 : vector<8x128xf32>
    %311 = math.tanh %305 : vector<8x128xf32>
    %312 = vector.extract_strided_slice %310 {offsets = [0, 0], sizes = [8, 32], strides = [1, 1]} : vector<8x128xf32> to vector<8x32xf32>
    %313 = vector.extract_strided_slice %310 {offsets = [0, 32], sizes = [8, 32], strides = [1, 1]} : vector<8x128xf32> to vector<8x32xf32>
    %314 = vector.extract_strided_slice %311 {offsets = [0, 64], sizes = [8, 32], strides = [1, 1]} : vector<8x128xf32> to vector<8x32xf32>
    %315 = vector.extract_strided_slice %310 {offsets = [0, 96], sizes = [8, 32], strides = [1, 1]} : vector<8x128xf32> to vector<8x32xf32>
    %316 = arith.mulf %313, %280 : vector<8x32xf32>
    %317 = arith.mulf %312, %314 : vector<8x32xf32>
    %318 = arith.addf %316, %317 : vector<8x32xf32>
    %319 = math.tanh %318 : vector<8x32xf32>
    %320 = arith.mulf %315, %319 : vector<8x32xf32>
    %c0_58 = arith.constant 0 : index
    %c0_59 = arith.constant 0 : index
    %321 = vector.load %arg8[%c0_58, %c0_59] : memref<32x1xf32, #tpu.memory_space<vmem>>, vector<32x1xf32>
    %cst_60 = arith.constant dense<0.000000e+00> : vector<8x1xf32>
    %322 = tpu.matmul %320, %321, %cst_60 {dimension_numbers = #tpu.dot_dimension_numbers<[1], [0], [0], [1], [0, 0, 1, 1], [], []>} : vector<8x32xf32>, vector<32x1xf32>, vector<8x1xf32> -> vector<8x1xf32>
    %c0_61 = arith.constant 0 : index
    %c0_62 = arith.constant 0 : index
    %323 = vector.load %arg9[%c0_61, %c0_62] : memref<1x1xf32, #tpu.memory_space<vmem>>, vector<1x1xf32>
    %324 = vector.broadcast %323 : vector<1x1xf32> to vector<8x1xf32>
    %325 = arith.addf %322, %324 : vector<8x1xf32>
    %c0_63 = arith.constant 0 : index
    %c0_64 = arith.constant 0 : index
    %326 = vector.load %arg10[%c0_63, %c0_64] : memref<8x1xf32, #tpu.memory_space<vmem>>, vector<8x1xf32>
    tpu.vector_store %arg10[%c0_63, %c0_64], %325 {strides = array<i32>} : memref<8x1xf32, #tpu.memory_space<vmem>>, vector<8x1xf32>,
    return
  }
  func.func @transform_0(%arg0: i32) -> (i32, i32, i32) {
    %c0_i32 = arith.constant 0 : i32
    %c0_i32_0 = arith.constant 0 : i32
    %c0_i32_1 = arith.constant 0 : i32
    return %c0_i32, %arg0, %c0_i32_0 : i32, i32, i32
  }
  func.func @transform_1(%arg0: i32) -> (i32, i32) {
    %c0_i32 = arith.constant 0 : i32
    %c0_i32_0 = arith.constant 0 : i32
    %c0_i32_1 = arith.constant 0 : i32
    return %c0_i32, %c0_i32_0 : i32, i32
  }
  func.func @transform_2(%arg0: i32) -> (i32, i32) {
    %c0_i32 = arith.constant 0 : i32
    %c0_i32_0 = arith.constant 0 : i32
    %c0_i32_1 = arith.constant 0 : i32
    return %c0_i32, %c0_i32_0 : i32, i32
  }
  func.func @transform_3(%arg0: i32) -> (i32, i32) {
    %c0_i32 = arith.constant 0 : i32
    %c0_i32_0 = arith.constant 0 : i32
    %c0_i32_1 = arith.constant 0 : i32
    return %c0_i32, %c0_i32_0 : i32, i32
  }
  func.func @transform_4(%arg0: i32) -> (i32, i32) {
    %c0_i32 = arith.constant 0 : i32
    %c0_i32_0 = arith.constant 0 : i32
    %c0_i32_1 = arith.constant 0 : i32
    return %c0_i32, %c0_i32_0 : i32, i32
  }
  func.func @transform_5(%arg0: i32) -> (i32, i32) {
    %c0_i32 = arith.constant 0 : i32
    %c0_i32_0 = arith.constant 0 : i32
    %c0_i32_1 = arith.constant 0 : i32
    return %c0_i32, %c0_i32_0 : i32, i32
  }
  func.func @transform_6(%arg0: i32) -> (i32, i32) {
    %c0_i32 = arith.constant 0 : i32
    %c0_i32_0 = arith.constant 0 : i32
    %c0_i32_1 = arith.constant 0 : i32
    return %c0_i32, %c0_i32_0 : i32, i32
  }
  func.func @transform_7(%arg0: i32) -> (i32, i32) {
    %c0_i32 = arith.constant 0 : i32
    %c0_i32_0 = arith.constant 0 : i32
    %c0_i32_1 = arith.constant 0 : i32
    return %c0_i32, %c0_i32_0 : i32, i32
  }
  func.func @transform_8(%arg0: i32) -> (i32, i32) {
    %c0_i32 = arith.constant 0 : i32
    %c0_i32_0 = arith.constant 0 : i32
    %c0_i32_1 = arith.constant 0 : i32
    return %c0_i32, %c0_i32_0 : i32, i32
  }
  func.func @transform_9(%arg0: i32) -> (i32, i32) {
    %c0_i32 = arith.constant 0 : i32
    %c0_i32_0 = arith.constant 0 : i32
    return %arg0, %c0_i32 : i32, i32
  }
}

</mosaic_0001>

<bundles_post_ra>
// kernel: tpu_custom_call.1
= control target key start
LH: loop header
LB: loop body
LE: loop exit
PB: predicated region body
PF: predicated region fallthrough
CT: control target
= control target key end

     0   :  { %vm68_vm0 = vcmask 1043456   ;;  %v3082_v0 = vmov 0.0   ;;  %vm43_vm1 = vcmask 31744   ;;  %vm3083_vm2 = vmmov 0   ;;  %s3084_s24 = smov 64   ;;  %s3085_s25 = smov 32   ;;  %s3726_s2 = inlined_call_operand.vmem [shape: f32[32,128], index: 2, kind: input, shape index: {}]   ;;  %s3727_s1 = inlined_call_operand.vmem [shape: f32[4,128], index: 1, kind: input, shape index: {}]   ;;  %s3728_s0 = inlined_call_operand.vmem [shape: f32[8,8,4], index: 0, kind: input, shape index: {}]   ;;  %s3729_s3 = inlined_call_operand.vmem [shape: f32[1,128], index: 3, kind: input, shape index: {}]   ;;  %s3730_s5 = inlined_call_operand.vmem [shape: f32[32,128], index: 5, kind: input, shape index: {}]   ;;  %s3731_s4 = inlined_call_operand.vmem [shape: f32[32,128], index: 4, kind: input, shape index: {}]   ;;  %s3732_s6 = inlined_call_operand.vmem [shape: f32[1,128], index: 6, kind: input, shape index: {}]   ;;  %s3733_s7 = inlined_call_operand.vmem [shape: f32[32,1], index: 7, kind: input, shape index: {}]   ;;  %s3734_s8 = inlined_call_operand.<no memory space> [shape: f32[1,1], index: 8, kind: input, shape index: {}]   ;;  %s3735_s9 = inlined_call_operand.vmem [shape: f32[8,1], index: 9, kind: output, shape index: {}]  }
   0x1   :  { %2661 = vmatprep.subr.mxu1 %v3082_v0  ;;  %v3140_v1 = vld [vmem:[%s3726_s2 + $0x18] sm:$0xff]  ;;  %v42_v2 = vld [vmem:[%s3727_s1] sm:$0xf]  ;;  %2669 = vmatprep.mubr.msk.f32.mxu1 %vm3083_vm2, %v3082_v0  ;;  %v3154_v4 = vld [vmem:[%s3726_s2 + $0x10] sm:$0xff]  ;;  %vm203_vm3 = vcmask 261120   ;;  %vm2456_vm4 = vcmask 7168  }
   0x2   :  { %v34_v3 = vld [vmem:[%s3728_s0] sm:$0xff]  ;;  %2662 = vmatpush3.msra.mxu1 %v3140_v1  ;;  %2647 = vmatprep.subr.msk.mxu0 %vm68_vm0, %v42_v2  ;;  %v35_v5 = vld [vmem:[%s3728_s0 + $0x8] sm:$0xff]  ;;  %v36_v25 = vld [vmem:[%s3728_s0 + $0x10] sm:$0xff] }
   0x3   :  { %2663 = vmatprep.subr.mxu1 %v3082_v0  ;;  %2648 = vmatpush3.msk.msra.mxu0 %vm68_vm0, %v42_v2  ;;  %v3163_v6 = vld [vmem:[%s3726_s2 + $0x8] sm:$0xff]  ;;  %v3172_v7 = vld [vmem:[%s3726_s2] sm:$0xff]  ;;  %v37_v26 = vld [vmem:[%s3728_s0 + $0x18] sm:$0xff] }
   0x4   :  { %2649 = vmatprep.mubr.msk.f32.mxu0 %vm43_vm1, %v34_v3  ;;  %2664 = vmatpush3.msra.mxu1 %v3154_v4  ;;  %v3187_v10 = vld [vmem:[%s3729_s3] ss:$0 sm:$0xff]  ;;  %v3204_v27 = vld [vmem:[%s3730_s5 + $0x18] sm:$0xff]  ;;  %v3215_v29 = vld [vmem:[%s3730_s5 + $0x10] sm:$0xff] }
   0x5   :  { %2650 = vmatmul.mubr.msk.f32.vlgmr.msra.gmra.mxu0 %vm43_vm1, %v35_v5  ;;  %2665 = vmatprep.subr.mxu1 %v3082_v0  ;;  %v3209_v28 = vld [vmem:[%s3731_s4 + $0x18] sm:$0xff]  ;;  %v3222_v30 = vld [vmem:[%s3731_s4 + $0x10] sm:$0xff]  ;;  %v3229_v31 = vld [vmem:[%s3730_s5 + $0x8] sm:$0xff] }
   0x6   :  { %2666 = vmatpush3.msra.mxu1 %v3163_v6  ;;  %2683 = vmatprep.subr.mxu0 %v3082_v0  ;;  %v38_v32 = vld [vmem:[%s3728_s0 + $0x20] sm:$0xff]  ;;  %v39_v33 = vld [vmem:[%s3728_s0 + $0x28] sm:$0xff]  ;;  %v40_v36 = vld [vmem:[%s3728_s0 + $0x30] sm:$0xff] }
   0x7   :  { %2667 = vmatprep.subr.mxu1 %v3082_v0  ;;  %2652 = vmatprep.mubr.msk.f32.mxu0 %vm43_vm1, %v36_v25  ;;  %v3244_v34 = vld [vmem:[%s3730_s5] sm:$0xff]  ;;  %v3251_v35 = vld [vmem:[%s3731_s4 + $0x8] sm:$0xff]  ;;  %v41_v37 = vld [vmem:[%s3728_s0 + $0x38] sm:$0xff] }
   0x8   :  { %2668 = vmatpush3.msra.mxu1 %v3172_v7  ;;  %2684 = vmatpush3.msra.mxu0 %v3209_v28  ;;  %v3272_v39 = vld [vmem:[%s3731_s4] sm:$0xff] }
   0x9   :  { %2670 = vmatmul.mubr.f32.vlgmr.msra.gmra.mxu1 %v3082_v0  ;;  %2672 = vmatprep.subr.mxu1 %v3082_v0  ;;  %v3327_v51 = vld [vmem:[%s3732_s6] ss:$0 sm:$0xff] }
   0xa   :  { %2680 = vmatprep.mubr.msk.f32.mxu1 %vm3083_vm2, %v3082_v0  ;;  %2673 = vmatpush3.msra.mxu1 %v3204_v27 }
   0xb   :  { %2674 = vmatprep.subr.mxu1 %v3082_v0  ;;  %2653 = vmatmul.mubr.msk.f32.gmra.mxu0 %vm43_vm1, %v37_v26 }
   0xc   :  { %2675 = vmatpush3.msra.mxu1 %v3215_v29  ;;  %2685 = vmatprep.subr.mxu0 %v3082_v0 }
   0xd   :  { %2676 = vmatprep.subr.mxu1 %v3082_v0  ;;  %2686 = vmatpush3.msra.mxu0 %v3222_v30 }
   0xe   :  { %2677 = vmatpush3.msra.mxu1 %v3229_v31  ;;  %2655 = vmatprep.mubr.msk.f32.mxu0 %vm43_vm1, %v38_v32 }
   0xf   :  { %2678 = vmatprep.subr.mxu1 %v3082_v0  ;;  %2656 = vmatmul.mubr.msk.f32.gmra.mxu0 %vm43_vm1, %v39_v33 }
  0x10   :  { %2679 = vmatpush3.msra.mxu1 %v3244_v34  ;;  %2687 = vmatprep.subr.mxu0 %v3082_v0 }
  0x11   :  { %2681 = vmatmul.mubr.f32.vlgmr.msra.gmra.mxu1 %v3082_v0  ;;  %2688 = vmatpush3.msra.mxu0 %v3251_v35 }
  0x12   :  { %2694 = vmatprep.subr.mxu1 %v3082_v0  ;;  %2658 = vmatprep.mubr.msk.f32.mxu0 %vm43_vm1, %v40_v36 }
  0x13   :  { %2695 = vmatpush3.msra.mxu1 %v3140_v1  ;;  %2659 = vmatmul.mubr.msk.f32.gmra.mxu0 %vm43_vm1, %v41_v37 }
  0x14   :  { %2696 = vmatprep.subr.mxu1 %v3082_v0  ;;  %2689 = vmatprep.subr.mxu0 %v3082_v0 }
  0x15   :  { %2697 = vmatpush3.msra.mxu1 %v3154_v4  ;;  %2690 = vmatpush3.msra.mxu0 %v3272_v39 }
  0x16   :  { %2698 = vmatprep.subr.mxu1 %v3082_v0  ;;  %2691 = vmatprep.mubr.msk.f32.mxu0 %vm3083_vm2, %v3082_v0 }
  0x17   :  { %2699 = vmatpush3.msra.mxu1 %v3163_v6  ;;  %2702 = vmatprep.mubr.msk.f32.mxu1 %vm3083_vm2, %v3082_v0 }
  0x18   :  { %2700 = vmatprep.subr.mxu1 %v3082_v0  ;;  %2705 = vmatprep.subr.mxu0 %v3082_v0 }
  0x19   :  { %2701 = vmatpush3.msra.mxu1 %v3172_v7 }
  0x1a   :  { %2716 = vmatprep.subr.mxu1 %v3082_v0 }
  0xc5   :  { %v3182_v8 = vpop.f32.mrf.mxu0 }
  0xc7   :  { %v138_v9 = vpop.f32.mrf.mxu0 }
  0xc9   :  { %v273_v11 = vpop.f32.mrf.mxu1 }
  0xca   :  { %v277_v12 = vadd.f32 %v273_v11, %v138_v9 }
  0xcb   :  { %v2671_v13 = vpop.f32.mrf.mxu1  ;;  %v3312_v45 = vpop.f32.mrf.mxu0 }
  0xcc   :  { %v278_v14 = vadd.f32 %v3187_v10, %v277_v12 }
  0xcd   :  { %v3314_v46 = vpop.f32.mrf.mxu0 }
  0xce   :  { %2940 = vtanh.f32 %v278_v14  ;;  %v2473_v16 = vmul.f32 -1.442695, %v278_v14 }
  0xcf   :  { %v3316_v47 = vpop.f32.mrf.mxu0 }
  0xd0   :  { %2942 = vpow2.f32 %v2473_v16 }
  0xd1   :  { %v369_v42 = vpop.f32.mrf.mxu1  ;;  %v3318_v48 = vpop.f32.mrf.mxu0 }
  0xd3   :  { %v2682_v43 = vpop.f32.mrf.mxu1  ;;  %v3320_v49 = vpop.f32.mrf.mxu0 }
  0xd5   :  { %v3322_v50 = vpop.f32.mrf.mxu0 }
  0xdb   :  { %v2941_v15 = vpop.eup %2940 }
  0xdc   :  { %288 = vrot.lane.b32.xlu0 %v2941_v15, %s3084_s24 }
  0xdd   :  { %v2943_v17 = vpop.eup %2942 }
  0xde   :  { %v282_v18 = vadd.f32 1.0, %v2943_v17 }
  0xe0   :  { %2944 = vrcp.f32 %v282_v18 }
  0xed   :  { %v2945_v19 = vpop.eup %2944 }
  0xee   :  { %v286_v22 = vmul.f32 0.0, %v2945_v19 }
 0x14e   :  { %v289_v20 = vpop.permute.xlu0 %288 }
 0x14f   :  { %v291_v21 = vmul.f32 %v2945_v19, %v289_v20 }
 0x151   :  { %293 = vrot.lane.b32.xlu0 %v291_v21, %s3085_s25 }
 0x1c3   :  { %v294_v23 = vpop.permute.xlu0 %293 }
 0x1c4   :  { %v3192_v24 = vadd.f32 %v294_v23, %v286_v22 }
 0x1c6   :  { %2946 = vtanh.f32 %v3192_v24 }
 0x1d3   :  { %v2947_v38 = vpop.eup %2946 }
 0x1d4   :  { %299 = vrot.lane.b32.xlu1 %v2947_v38, %s3084_s24 }
 0x246   :  { %v300_v40 = vpop.permute.xlu1 %299 }
 0x247   :  { %v302_v41 = vmul.f32 %v2945_v19, %v300_v40 }
 0x249   :  { %374 = vrot.lane.b32.xlu1 %v302_v41, %s3085_s25 }
 0x2bb   :  { %v375_v44 = vpop.permute.xlu1 %374 }
 0x2bc   :  { %2692 = vmatmul.mubr.msk.f32.vlgmr.msra.gmra.mxu0 %vm203_vm3, %v375_v44  ;;  %2703 = vmatmul.mubr.msk.f32.vlgmr.msra.gmra.mxu1 %vm203_vm3, %v375_v44 }
 0x2bd   :  { %2706 = vmatpush3.msra.mxu0 %v3204_v27  ;;  %2717 = vmatpush3.msra.mxu1 %v3209_v28 }
 0x2be   :  { %2707 = vmatprep.subr.mxu0 %v3082_v0  ;;  %2718 = vmatprep.subr.mxu1 %v3082_v0 }
 0x2bf   :  { %2708 = vmatpush3.msra.mxu0 %v3215_v29  ;;  %2719 = vmatpush3.msra.mxu1 %v3222_v30 }
 0x2c0   :  { %2709 = vmatprep.subr.mxu0 %v3082_v0  ;;  %2720 = vmatprep.subr.mxu1 %v3082_v0 }
 0x2c1   :  { %2710 = vmatpush3.msra.mxu0 %v3229_v31  ;;  %2721 = vmatpush3.msra.mxu1 %v3251_v35 }
 0x2c2   :  { %2711 = vmatprep.subr.mxu0 %v3082_v0  ;;  %2722 = vmatprep.subr.mxu1 %v3082_v0 }
 0x2c3   :  { %2712 = vmatpush3.msra.mxu0 %v3244_v34  ;;  %2723 = vmatpush3.msra.mxu1 %v3272_v39 }
 0x2c4   :  { %2724 = vmatprep.mubr.msk.f32.mxu1 %vm3083_vm2, %v3082_v0  ;;  %2713 = vmatprep.mubr.msk.f32.mxu0 %vm3083_vm2, %v3082_v0 }
 0x2c5   :  { %2727 = vmatprep.subr.mxu0 %v3082_v0  ;;  %2738 = vmatprep.subr.mxu1 %v3082_v0 }
 0x37c   :  { %v444_v52 = vpop.f32.mrf.mxu0  ;;  %v539_v53 = vpop.f32.mrf.mxu1 }
 0x37d   :  { %v445_v54 = vadd.f32 %v444_v52, %v369_v42  ;;  %v543_v55 = vadd.f32 %v3182_v8, %v539_v53 }
 0x37e   :  { %v2693_v56 = vpop.f32.mrf.mxu0  ;;  %v2704_v57 = vpop.f32.mrf.mxu1 }
 0x37f   :  { %v448_v58 = vadd.f32 %v3327_v51, %v445_v54  ;;  %v544_v59 = vadd.f32 %v3187_v10, %v543_v55 }
 0x381   :  { %2948 = vtanh.f32 %v448_v58  ;;  %v2475_v62 = vmul.f32 -1.442695, %v448_v58  ;;  %v2477_v63 = vmul.f32 -1.442695, %v544_v59 }
 0x382   :  { %2950 = vtanh.f32 %v544_v59 }
 0x383   :  { %2952 = vpow2.f32 %v2475_v62 }
 0x384   :  { %2954 = vpow2.f32 %v2477_v63 }
 0x38e   :  { %v2949_v60 = vpop.eup %2948 }
 0x38f   :  { %v2951_v61 = vpop.eup %2950  ;;  %458 = vrot.lane.b32.xlu0 %v2949_v60, %s3084_s24 }
 0x390   :  { %554 = vrot.lane.b32.xlu1 %v2951_v61, %s3084_s24  ;;  %v2953_v2 = vpop.eup %2952 }
 0x391   :  { %v2955_v3 = vpop.eup %2954  ;;  %v452_v5 = vadd.f32 1.0, %v2953_v2 }
 0x392   :  { %v548_v8 = vadd.f32 1.0, %v2955_v3 }
 0x393   :  { %2956 = vrcp.f32 %v452_v5 }
 0x394   :  { %2958 = vrcp.f32 %v548_v8 }
 0x3a0   :  { %v2957_v9 = vpop.eup %2956 }
 0x3a1   :  { %v2959_v12 = vpop.eup %2958  ;;  %v456_v16 = vmul.f32 0.0, %v2957_v9 }
 0x3a2   :  { %v552_v17 = vmul.f32 %v2959_v12, %v3192_v24 }
 0x401   :  { %v459_v11 = vpop.permute.xlu0 %458 }
 0x402   :  { %v555_v13 = vpop.permute.xlu1 %554  ;;  %v461_v14 = vmul.f32 %v2957_v9, %v459_v11 }
 0x403   :  { %v557_v15 = vmul.f32 %v2959_v12, %v555_v13 }
 0x404   :  { %463 = vrot.lane.b32.xlu0 %v461_v14, %s3085_s25 }
 0x405   :  { %559 = vrot.lane.b32.xlu1 %v557_v15, %s3085_s25 }
 0x476   :  { %v464_v18 = vpop.permute.xlu0 %463 }
 0x477   :  { %v560_v19 = vpop.permute.xlu1 %559  ;;  %v3337_v20 = vadd.f32 %v464_v18, %v456_v16 }
 0x478   :  { %v3339_v21 = vadd.f32 %v560_v19, %v552_v17 }
 0x479   :  { %2960 = vtanh.f32 %v3337_v20 }
 0x47a   :  { %2962 = vtanh.f32 %v3339_v21 }
 0x486   :  { %v2961_v22 = vpop.eup %2960 }
 0x487   :  { %v2963_v23 = vpop.eup %2962  ;;  %469 = vrot.lane.b32.xlu0 %v2961_v22, %s3084_s24 }
 0x488   :  { %565 = vrot.lane.b32.xlu1 %v2963_v23, %s3084_s24 }
 0x4f9   :  { %v470_v25 = vpop.permute.xlu0 %469 }
 0x4fa   :  { %v566_v26 = vpop.permute.xlu1 %565  ;;  %v472_v32 = vmul.f32 %v2957_v9, %v470_v25 }
 0x4fb   :  { %v568_v24 = vmul.f32 %v2959_v12, %v566_v26 }
 0x4fc   :  { %570 = vrot.lane.b32.xlu0 %v472_v32, %s3085_s25 }
 0x4fd   :  { %645 = vrot.lane.b32.xlu1 %v568_v24, %s3085_s25 }
 0x56e   :  { %v571_v33 = vpop.permute.xlu0 %570 }
 0x56f   :  { %v646_v36 = vpop.permute.xlu1 %645  ;;  %2714 = vmatmul.mubr.msk.f32.vlgmr.msra.gmra.mxu0 %vm203_vm3, %v571_v33 }
 0x570   :  { %2725 = vmatmul.mubr.msk.f32.vlgmr.msra.gmra.mxu1 %vm203_vm3, %v646_v36  ;;  %2728 = vmatpush3.msra.mxu0 %v3140_v1 }
 0x571   :  { %2729 = vmatprep.subr.mxu0 %v3082_v0  ;;  %2735 = vmatprep.mubr.msk.f32.mxu0 %vm3083_vm2, %v3082_v0 }
 0x572   :  { %2730 = vmatpush3.msra.mxu0 %v3154_v4  ;;  %2739 = vmatpush3.msra.mxu1 %v3204_v27 }
 0x573   :  { %2731 = vmatprep.subr.mxu0 %v3082_v0  ;;  %2740 = vmatprep.subr.mxu1 %v3082_v0 }
 0x574   :  { %2732 = vmatpush3.msra.mxu0 %v3163_v6  ;;  %2741 = vmatpush3.msra.mxu1 %v3215_v29 }
 0x575   :  { %2733 = vmatprep.subr.mxu0 %v3082_v0  ;;  %2742 = vmatprep.subr.mxu1 %v3082_v0 }
 0x576   :  { %2734 = vmatpush3.msra.mxu0 %v3172_v7  ;;  %2743 = vmatpush3.msra.mxu1 %v3229_v31 }
 0x577   :  { %2736 = vmatmul.mubr.msk.f32.vlgmr.msra.gmra.mxu0 %vm203_vm3, %v646_v36  ;;  %2744 = vmatprep.subr.mxu1 %v3082_v0 }
 0x578   :  { %2745 = vmatpush3.msra.mxu1 %v3244_v34  ;;  %2746 = vmatprep.mubr.msk.f32.mxu1 %vm3083_vm2, %v3082_v0 }
 0x579   :  { %2749 = vmatprep.subr.mxu0 %v3082_v0  ;;  %2760 = vmatprep.subr.mxu1 %v3082_v0 }
 0x57a   :  { %2750 = vmatpush3.msra.mxu0 %v3209_v28  ;;  %2757 = vmatprep.mubr.msk.f32.mxu0 %vm3083_vm2, %v3082_v0 }
 0x57b   :  { %2751 = vmatprep.subr.mxu0 %v3082_v0 }
 0x57c   :  { %2752 = vmatpush3.msra.mxu0 %v3222_v30 }
 0x57d   :  { %2753 = vmatprep.subr.mxu0 %v3082_v0 }
 0x57e   :  { %2754 = vmatpush3.msra.mxu0 %v3251_v35 }
 0x57f   :  { %2755 = vmatprep.subr.mxu0 %v3082_v0 }
 0x580   :  { %2756 = vmatpush3.msra.mxu0 %v3272_v39 }
 0x581   :  { %2771 = vmatprep.subr.mxu0 %v3082_v0 }
 0x62f   :  { %v640_v37 = vpop.f32.mrf.mxu0 }
 0x630   :  { %v715_v38 = vpop.f32.mrf.mxu1 }
 0x631   :  { %v716_v40 = vadd.f32 %v715_v38, %v640_v37  ;;  %v2715_v41 = vpop.f32.mrf.mxu0 }
 0x632   :  { %v2726_v42 = vpop.f32.mrf.mxu1 }
 0x633   :  { %v719_v43 = vadd.f32 %v3327_v51, %v716_v40 }
 0x635   :  { %2964 = vtanh.f32 %v719_v43  ;;  %v2480_v57 = vmul.f32 -1.442695, %v719_v43 }
 0x637   :  { %v810_v44 = vpop.f32.mrf.mxu0 }
 0x638   :  { %v814_v52 = vadd.f32 %v810_v44, %v3314_v46 }
 0x639   :  { %v2737_v53 = vpop.f32.mrf.mxu0 }
 0x63a   :  { %v815_v54 = vadd.f32 %v3187_v10, %v814_v52 }
 0x63c   :  { %2966 = vtanh.f32 %v815_v54  ;;  %v2482_v58 = vmul.f32 -1.442695, %v815_v54 }
 0x63d   :  { %2968 = vpow2.f32 %v2480_v57 }
 0x63e   :  { %2970 = vpow2.f32 %v2482_v58 }
 0x642   :  { %v2965_v55 = vpop.eup %2964 }
 0x643   :  { %729 = vrot.lane.b32.xlu0 %v2965_v55, %s3084_s24 }
 0x649   :  { %v2967_v56 = vpop.eup %2966 }
 0x64a   :  { %825 = vrot.lane.b32.xlu1 %v2967_v56, %s3084_s24  ;;  %v2969_v59 = vpop.eup %2968 }
 0x64b   :  { %v723_v60 = vadd.f32 1.0, %v2969_v59  ;;  %v2971_v61 = vpop.eup %2970 }
 0x64c   :  { %v819_v62 = vadd.f32 1.0, %v2971_v61 }
 0x64d   :  { %2972 = vrcp.f32 %v723_v60 }
 0x64e   :  { %2974 = vrcp.f32 %v819_v62 }
 0x65a   :  { %v2973_v46 = vpop.eup %2972 }
 0x65b   :  { %v2975_v3 = vpop.eup %2974  ;;  %v727_v9 = vmul.f32 %v2973_v46, %v3337_v20 }
 0x65c   :  { %v823_v13 = vmul.f32 %v2975_v3, %v3339_v21 }
 0x6b5   :  { %v730_v63 = vpop.permute.xlu0 %729 }
 0x6b6   :  { %v732_v2 = vmul.f32 %v2973_v46, %v730_v63 }
 0x6b8   :  { %734 = vrot.lane.b32.xlu0 %v732_v2, %s3085_s25 }
 0x6bc   :  { %v826_v5 = vpop.permute.xlu1 %825 }
 0x6bd   :  { %v828_v8 = vmul.f32 %v2975_v3, %v826_v5 }
 0x6bf   :  { %830 = vrot.lane.b32.xlu1 %v828_v8, %s3085_s25 }
 0x72a   :  { %v735_v11 = vpop.permute.xlu0 %734 }
 0x72b   :  { %v3388_v12 = vadd.f32 %v735_v11, %v727_v9 }
 0x72d   :  { %2976 = vtanh.f32 %v3388_v12 }
 0x731   :  { %v831_v14 = vpop.permute.xlu1 %830 }
 0x732   :  { %v3392_v15 = vadd.f32 %v831_v14, %v823_v13 }
 0x734   :  { %2978 = vtanh.f32 %v3392_v15 }
 0x73a   :  { %v2977_v16 = vpop.eup %2976 }
 0x73b   :  { %740 = vrot.lane.b32.xlu0 %v2977_v16, %s3084_s24 }
 0x741   :  { %v2979_v17 = vpop.eup %2978 }
 0x742   :  { %836 = vrot.lane.b32.xlu1 %v2979_v17, %s3084_s24 }
 0x7ad   :  { %v741_v18 = vpop.permute.xlu0 %740 }
 0x7ae   :  { %v743_v19 = vmul.f32 %v2973_v46, %v741_v18 }
 0x7b0   :  { %841 = vrot.lane.b32.xlu0 %v743_v19, %s3085_s25 }
 0x7b4   :  { %v837_v20 = vpop.permute.xlu1 %836 }
 0x7b5   :  { %v839_v22 = vmul.f32 %v2975_v3, %v837_v20 }
 0x7b7   :  { %916 = vrot.lane.b32.xlu1 %v839_v22, %s3085_s25 }
 0x822   :  { %v842_v21 = vpop.permute.xlu0 %841 }
 0x823   :  { %2747 = vmatmul.mubr.msk.f32.vlgmr.msra.gmra.mxu1 %vm203_vm3, %v842_v21 }
 0x824   :  { %2761 = vmatpush3.msra.mxu1 %v3140_v1  ;;  %2768 = vmatprep.mubr.msk.f32.mxu1 %vm3083_vm2, %v3082_v0 }
 0x825   :  { %2762 = vmatprep.subr.mxu1 %v3082_v0 }
 0x826   :  { %2763 = vmatpush3.msra.mxu1 %v3154_v4 }
 0x827   :  { %2764 = vmatprep.subr.mxu1 %v3082_v0 }
 0x828   :  { %2765 = vmatpush3.msra.mxu1 %v3163_v6 }
 0x829   :  { %2766 = vmatprep.subr.mxu1 %v3082_v0  ;;  %v917_v23 = vpop.permute.xlu1 %916 }
 0x82a   :  { %2767 = vmatpush3.msra.mxu1 %v3172_v7  ;;  %2758 = vmatmul.mubr.msk.f32.vlgmr.msra.gmra.mxu0 %vm203_vm3, %v917_v23 }
 0x82b   :  { %2769 = vmatmul.mubr.msk.f32.vlgmr.msra.gmra.mxu1 %vm203_vm3, %v917_v23  ;;  %2772 = vmatpush3.msra.mxu0 %v3204_v27 }
 0x82c   :  { %2782 = vmatprep.subr.mxu1 %v3082_v0  ;;  %2773 = vmatprep.subr.mxu0 %v3082_v0 }
 0x82d   :  { %2783 = vmatpush3.msra.mxu1 %v3209_v28  ;;  %2774 = vmatpush3.msra.mxu0 %v3215_v29 }
 0x82e   :  { %2784 = vmatprep.subr.mxu1 %v3082_v0  ;;  %2775 = vmatprep.subr.mxu0 %v3082_v0 }
 0x82f   :  { %2785 = vmatpush3.msra.mxu1 %v3222_v30  ;;  %2776 = vmatpush3.msra.mxu0 %v3229_v31 }
 0x830   :  { %2786 = vmatprep.subr.mxu1 %v3082_v0  ;;  %2777 = vmatprep.subr.mxu0 %v3082_v0 }
 0x831   :  { %2787 = vmatpush3.msra.mxu1 %v3251_v35  ;;  %2778 = vmatpush3.msra.mxu0 %v3244_v34 }
 0x832   :  { %2788 = vmatprep.subr.mxu1 %v3082_v0  ;;  %2790 = vmatprep.mubr.msk.f32.mxu1 %vm3083_vm2, %v3082_v0 }
 0x833   :  { %2789 = vmatpush3.msra.mxu1 %v3272_v39  ;;  %2779 = vmatprep.mubr.msk.f32.mxu0 %vm3083_vm2, %v3082_v0 }
 0x834   :  { %2793 = vmatprep.subr.mxu0 %v3082_v0  ;;  %2804 = vmatprep.subr.mxu1 %v3082_v0 }
 0x8e3   :  { %v911_v25 = vpop.f32.mrf.mxu1 }
 0x8e5   :  { %v2748_v26 = vpop.f32.mrf.mxu1 }
 0x8ea   :  { %v986_v32 = vpop.f32.mrf.mxu0 }
 0x8eb   :  { %v987_v24 = vadd.f32 %v986_v32, %v911_v25  ;;  %v1081_v33 = vpop.f32.mrf.mxu1 }
 0x8ec   :  { %v1085_v36 = vadd.f32 %v3312_v45, %v1081_v33  ;;  %v2759_v37 = vpop.f32.mrf.mxu0 }
 0x8ed   :  { %v990_v38 = vadd.f32 %v3327_v51, %v987_v24  ;;  %v2770_v40 = vpop.f32.mrf.mxu1 }
 0x8ee   :  { %v1086_v41 = vadd.f32 %v3187_v10, %v1085_v36 }
 0x8ef   :  { %2980 = vtanh.f32 %v990_v38  ;;  %v2485_v44 = vmul.f32 -1.442695, %v990_v38 }
 0x8f0   :  { %2982 = vtanh.f32 %v1086_v41  ;;  %v2487_v52 = vmul.f32 -1.442695, %v1086_v41 }
 0x8f1   :  { %2984 = vpow2.f32 %v2485_v44 }
 0x8f2   :  { %2986 = vpow2.f32 %v2487_v52 }
 0x8fc   :  { %v2981_v42 = vpop.eup %2980 }
 0x8fd   :  { %v2983_v43 = vpop.eup %2982  ;;  %1000 = vrot.lane.b32.xlu0 %v2981_v42, %s3084_s24 }
 0x8fe   :  { %1096 = vrot.lane.b32.xlu1 %v2983_v43, %s3084_s24  ;;  %v2985_v53 = vpop.eup %2984 }
 0x8ff   :  { %v2987_v45 = vpop.eup %2986  ;;  %v994_v54 = vadd.f32 1.0, %v2985_v53 }
 0x900   :  { %v1090_v55 = vadd.f32 1.0, %v2987_v45 }
 0x901   :  { %2988 = vrcp.f32 %v994_v54 }
 0x902   :  { %2990 = vrcp.f32 %v1090_v55 }
 0x90e   :  { %v2989_v56 = vpop.eup %2988 }
 0x90f   :  { %v2991_v58 = vpop.eup %2990  ;;  %v998_v62 = vmul.f32 %v2989_v56, %v3388_v12 }
 0x910   :  { %v1094_v46 = vmul.f32 %v2991_v58, %v3392_v15 }
 0x96f   :  { %v1001_v57 = vpop.permute.xlu0 %1000 }
 0x970   :  { %v1097_v59 = vpop.permute.xlu1 %1096  ;;  %v1003_v60 = vmul.f32 %v2989_v56, %v1001_v57 }
 0x971   :  { %v1099_v61 = vmul.f32 %v2991_v58, %v1097_v59 }
 0x972   :  { %1005 = vrot.lane.b32.xlu0 %v1003_v60, %s3085_s25 }
 0x973   :  { %1101 = vrot.lane.b32.xlu1 %v1099_v61, %s3085_s25 }
 0x9e4   :  { %v1006_v63 = vpop.permute.xlu0 %1005 }
 0x9e5   :  { %v1102_v2 = vpop.permute.xlu1 %1101  ;;  %v3441_v3 = vadd.f32 %v1006_v63, %v998_v62 }
 0x9e6   :  { %v3443_v5 = vadd.f32 %v1102_v2, %v1094_v46 }
 0x9e7   :  { %2992 = vtanh.f32 %v3441_v3 }
 0x9e8   :  { %2994 = vtanh.f32 %v3443_v5 }
 0x9f4   :  { %v2993_v8 = vpop.eup %2992 }
 0x9f5   :  { %v2995_v9 = vpop.eup %2994  ;;  %1011 = vrot.lane.b32.xlu0 %v2993_v8, %s3084_s24 }
 0x9f6   :  { %1107 = vrot.lane.b32.xlu1 %v2995_v9, %s3084_s24 }
 0xa67   :  { %v1012_v11 = vpop.permute.xlu0 %1011 }
 0xa68   :  { %v1108_v12 = vpop.permute.xlu1 %1107  ;;  %v1014_v13 = vmul.f32 %v2989_v56, %v1012_v11 }
 0xa69   :  { %v1110_v14 = vmul.f32 %v2991_v58, %v1108_v12 }
 0xa6a   :  { %1112 = vrot.lane.b32.xlu0 %v1014_v13, %s3085_s25 }
 0xa6b   :  { %1187 = vrot.lane.b32.xlu1 %v1110_v14, %s3085_s25 }
 0xadc   :  { %v1113_v15 = vpop.permute.xlu0 %1112 }
 0xadd   :  { %v1188_v16 = vpop.permute.xlu1 %1187  ;;  %2780 = vmatmul.mubr.msk.f32.vlgmr.msra.gmra.mxu0 %vm203_vm3, %v1113_v15 }
 0xade   :  { %2791 = vmatmul.mubr.msk.f32.vlgmr.msra.gmra.mxu1 %vm203_vm3, %v1188_v16  ;;  %2794 = vmatpush3.msra.mxu0 %v3140_v1 }
 0xadf   :  { %2795 = vmatprep.subr.mxu0 %v3082_v0  ;;  %2801 = vmatprep.mubr.msk.f32.mxu0 %vm3083_vm2, %v3082_v0 }
 0xae0   :  { %2796 = vmatpush3.msra.mxu0 %v3154_v4  ;;  %2805 = vmatpush3.msra.mxu1 %v3204_v27 }
 0xae1   :  { %2797 = vmatprep.subr.mxu0 %v3082_v0  ;;  %2806 = vmatprep.subr.mxu1 %v3082_v0 }
 0xae2   :  { %2798 = vmatpush3.msra.mxu0 %v3163_v6  ;;  %2807 = vmatpush3.msra.mxu1 %v3215_v29 }
 0xae3   :  { %2799 = vmatprep.subr.mxu0 %v3082_v0  ;;  %2808 = vmatprep.subr.mxu1 %v3082_v0 }
 0xae4   :  { %2800 = vmatpush3.msra.mxu0 %v3172_v7  ;;  %2809 = vmatpush3.msra.mxu1 %v3229_v31 }
 0xae5   :  { %2802 = vmatmul.mubr.msk.f32.vlgmr.msra.gmra.mxu0 %vm203_vm3, %v1188_v16  ;;  %2810 = vmatprep.subr.mxu1 %v3082_v0 }
 0xae6   :  { %2811 = vmatpush3.msra.mxu1 %v3244_v34  ;;  %2812 = vmatprep.mubr.msk.f32.mxu1 %vm3083_vm2, %v3082_v0 }
 0xae7   :  { %2815 = vmatprep.subr.mxu0 %v3082_v0  ;;  %2826 = vmatprep.subr.mxu1 %v3082_v0 }
 0xae8   :  { %2816 = vmatpush3.msra.mxu0 %v3209_v28  ;;  %2823 = vmatprep.mubr.msk.f32.mxu0 %vm3083_vm2, %v3082_v0 }
 0xae9   :  { %2817 = vmatprep.subr.mxu0 %v3082_v0 }
 0xaea   :  { %2818 = vmatpush3.msra.mxu0 %v3222_v30 }
 0xaeb   :  { %2819 = vmatprep.subr.mxu0 %v3082_v0 }
 0xaec   :  { %2820 = vmatpush3.msra.mxu0 %v3251_v35 }
 0xaed   :  { %2821 = vmatprep.subr.mxu0 %v3082_v0 }
 0xaee   :  { %2822 = vmatpush3.msra.mxu0 %v3272_v39 }
 0xaef   :  { %2837 = vmatprep.subr.mxu0 %v3082_v0 }
 0xb9d   :  { %v1182_v17 = vpop.f32.mrf.mxu0 }
 0xb9e   :  { %v1257_v18 = vpop.f32.mrf.mxu1 }
 0xb9f   :  { %v1258_v19 = vadd.f32 %v1257_v18, %v1182_v17  ;;  %v2781_v20 = vpop.f32.mrf.mxu0 }
 0xba0   :  { %v2792_v22 = vpop.f32.mrf.mxu1 }
 0xba1   :  { %v1261_v21 = vadd.f32 %v3327_v51, %v1258_v19 }
 0xba3   :  { %2996 = vtanh.f32 %v1261_v21  ;;  %v2490_v36 = vmul.f32 -1.442695, %v1261_v21 }
 0xba5   :  { %v1352_v23 = vpop.f32.mrf.mxu0 }
 0xba6   :  { %v1356_v25 = vadd.f32 %v1352_v23, %v3318_v48 }
 0xba7   :  { %v2803_v26 = vpop.f32.mrf.mxu0 }
 0xba8   :  { %v1357_v32 = vadd.f32 %v3187_v10, %v1356_v25 }
 0xbaa   :  { %2998 = vtanh.f32 %v1357_v32  ;;  %v2492_v37 = vmul.f32 -1.442695, %v1357_v32 }
 0xbab   :  { %3000 = vpow2.f32 %v2490_v36 }
 0xbac   :  { %3002 = vpow2.f32 %v2492_v37 }
 0xbb0   :  { %v2997_v24 = vpop.eup %2996 }
 0xbb1   :  { %1271 = vrot.lane.b32.xlu0 %v2997_v24, %s3084_s24 }
 0xbb7   :  { %v2999_v33 = vpop.eup %2998 }
 0xbb8   :  { %1367 = vrot.lane.b32.xlu1 %v2999_v33, %s3084_s24  ;;  %v3001_v38 = vpop.eup %3000 }
 0xbb9   :  { %v1265_v40 = vadd.f32 1.0, %v3001_v38  ;;  %v3003_v41 = vpop.eup %3002 }
 0xbba   :  { %v1361_v42 = vadd.f32 1.0, %v3003_v41 }
 0xbbb   :  { %3004 = vrcp.f32 %v1265_v40 }
 0xbbc   :  { %3006 = vrcp.f32 %v1361_v42 }
 0xbc8   :  { %v3005_v48 = vpop.eup %3004 }
 0xbc9   :  { %v3007_v52 = vpop.eup %3006  ;;  %v1269_v54 = vmul.f32 %v3005_v48, %v3441_v3 }
 0xbca   :  { %v1365_v57 = vmul.f32 %v3007_v52, %v3443_v5 }
 0xc23   :  { %v1272_v43 = vpop.permute.xlu0 %1271 }
 0xc24   :  { %v1274_v44 = vmul.f32 %v3005_v48, %v1272_v43 }
 0xc26   :  { %1276 = vrot.lane.b32.xlu0 %v1274_v44, %s3085_s25 }
 0xc2a   :  { %v1368_v53 = vpop.permute.xlu1 %1367 }
 0xc2b   :  { %v1370_v45 = vmul.f32 %v3007_v52, %v1368_v53 }
 0xc2d   :  { %1372 = vrot.lane.b32.xlu1 %v1370_v45, %s3085_s25 }
 0xc98   :  { %v1277_v55 = vpop.permute.xlu0 %1276 }
 0xc99   :  { %v3492_v56 = vadd.f32 %v1277_v55, %v1269_v54  ;;  %v3560_v54 = vld [vmem:[%s3726_s2 + $0x18] sm:$0xff]  ;;  %v3569_v55 = vld [vmem:[%s3726_s2 + $0x10] sm:$0xff] }
 0xc9b   :  { %3008 = vtanh.f32 %v3492_v56 }
 0xc9f   :  { %v1373_v58 = vpop.permute.xlu1 %1372 }
 0xca0   :  { %v3496_v59 = vadd.f32 %v1373_v58, %v1365_v57 }
 0xca2   :  { %3010 = vtanh.f32 %v3496_v59 }
 0xca8   :  { %v3009_v60 = vpop.eup %3008 }
 0xca9   :  { %1282 = vrot.lane.b32.xlu0 %v3009_v60, %s3084_s24 }
 0xcaf   :  { %v3011_v61 = vpop.eup %3010 }
 0xcb0   :  { %1378 = vrot.lane.b32.xlu1 %v3011_v61, %s3084_s24 }
 0xd1b   :  { %v1283_v62 = vpop.permute.xlu0 %1282 }
 0xd1c   :  { %v1285_v46 = vmul.f32 %v3005_v48, %v1283_v62 }
 0xd1e   :  { %1383 = vrot.lane.b32.xlu0 %v1285_v46, %s3085_s25 }
 0xd22   :  { %v1379_v63 = vpop.permute.xlu1 %1378 }
 0xd23   :  { %v1381_v2 = vmul.f32 %v3007_v52, %v1379_v63 }
 0xd25   :  { %1458 = vrot.lane.b32.xlu1 %v1381_v2, %s3085_s25 }
 0xd90   :  { %v1384_v3 = vpop.permute.xlu0 %1383 }
 0xd91   :  { %2813 = vmatmul.mubr.msk.f32.vlgmr.msra.gmra.mxu1 %vm203_vm3, %v1384_v3 }
 0xd92   :  { %2827 = vmatpush3.msra.mxu1 %v3140_v1  ;;  %2834 = vmatprep.mubr.msk.f32.mxu1 %vm3083_vm2, %v3082_v0 }
 0xd93   :  { %2828 = vmatprep.subr.mxu1 %v3082_v0 }
 0xd94   :  { %2829 = vmatpush3.msra.mxu1 %v3154_v4 }
 0xd95   :  { %2830 = vmatprep.subr.mxu1 %v3082_v0 }
 0xd96   :  { %2831 = vmatpush3.msra.mxu1 %v3163_v6 }
 0xd97   :  { %2832 = vmatprep.subr.mxu1 %v3082_v0  ;;  %v1459_v5 = vpop.permute.xlu1 %1458 }
 0xd98   :  { %2833 = vmatpush3.msra.mxu1 %v3172_v7  ;;  %2824 = vmatmul.mubr.msk.f32.vlgmr.msra.gmra.mxu0 %vm203_vm3, %v1459_v5 }
 0xd99   :  { %2835 = vmatmul.mubr.msk.f32.vlgmr.msra.gmra.mxu1 %vm203_vm3, %v1459_v5  ;;  %2838 = vmatpush3.msra.mxu0 %v3204_v27 }
 0xd9a   :  { %2848 = vmatprep.subr.mxu1 %v3082_v0  ;;  %2839 = vmatprep.subr.mxu0 %v3082_v0 }
 0xd9b   :  { %2849 = vmatpush3.msra.mxu1 %v3209_v28  ;;  %2840 = vmatpush3.msra.mxu0 %v3215_v29 }
 0xd9c   :  { %2850 = vmatprep.subr.mxu1 %v3082_v0  ;;  %2841 = vmatprep.subr.mxu0 %v3082_v0 }
 0xd9d   :  { %2851 = vmatpush3.msra.mxu1 %v3222_v30  ;;  %2842 = vmatpush3.msra.mxu0 %v3229_v31 }
 0xd9e   :  { %2852 = vmatprep.subr.mxu1 %v3082_v0  ;;  %2843 = vmatprep.subr.mxu0 %v3082_v0 }
 0xd9f   :  { %2853 = vmatpush3.msra.mxu1 %v3251_v35  ;;  %2844 = vmatpush3.msra.mxu0 %v3244_v34 }
 0xda0   :  { %2854 = vmatprep.subr.mxu1 %v3082_v0  ;;  %2856 = vmatprep.mubr.msk.f32.mxu1 %vm3083_vm2, %v3082_v0 }
 0xda1   :  { %2855 = vmatpush3.msra.mxu1 %v3272_v39  ;;  %2845 = vmatprep.mubr.msk.f32.mxu0 %vm3083_vm2, %v3082_v0 }
 0xda2   :  { %2859 = vmatprep.subr.mxu0 %v3082_v0  ;;  %2870 = vmatprep.subr.mxu1 %v3082_v0 }
 0xe51   :  { %v1453_v1 = vpop.f32.mrf.mxu1 }
 0xe53   :  { %v2814_v4 = vpop.f32.mrf.mxu1 }
 0xe58   :  { %v1528_v6 = vpop.f32.mrf.mxu0 }
 0xe59   :  { %v1529_v7 = vadd.f32 %v1528_v6, %v1453_v1  ;;  %v1623_v8 = vpop.f32.mrf.mxu1 }
 0xe5a   :  { %v1627_v9 = vadd.f32 %v3316_v47, %v1623_v8  ;;  %v2825_v11 = vpop.f32.mrf.mxu0 }
 0xe5b   :  { %v1532_v12 = vadd.f32 %v3327_v51, %v1529_v7  ;;  %v2836_v13 = vpop.f32.mrf.mxu1 }
 0xe5c   :  { %v1628_v14 = vadd.f32 %v3187_v10, %v1627_v9 }
 0xe5d   :  { %3012 = vtanh.f32 %v1532_v12  ;;  %v2495_v17 = vmul.f32 -1.442695, %v1532_v12 }
 0xe5e   :  { %3014 = vtanh.f32 %v1628_v14  ;;  %v2497_v18 = vmul.f32 -1.442695, %v1628_v14 }
 0xe5f   :  { %3016 = vpow2.f32 %v2495_v17 }
 0xe60   :  { %3018 = vpow2.f32 %v2497_v18 }
 0xe6a   :  { %v3013_v15 = vpop.eup %3012 }
 0xe6b   :  { %v3015_v16 = vpop.eup %3014  ;;  %1542 = vrot.lane.b32.xlu0 %v3013_v15, %s3084_s24 }
 0xe6c   :  { %1638 = vrot.lane.b32.xlu1 %v3015_v16, %s3084_s24  ;;  %v3017_v19 = vpop.eup %3016 }
 0xe6d   :  { %v3019_v47 = vpop.eup %3018  ;;  %v1536_v20 = vadd.f32 1.0, %v3017_v19 }
 0xe6e   :  { %v1632_v22 = vadd.f32 1.0, %v3019_v47 }
 0xe6f   :  { %3020 = vrcp.f32 %v1536_v20 }
 0xe70   :  { %3022 = vrcp.f32 %v1632_v22 }
 0xe7c   :  { %v3021_v21 = vpop.eup %3020 }
 0xe7d   :  { %v3023_v23 = vpop.eup %3022  ;;  %v1540_v24 = vmul.f32 %v3021_v21, %v3492_v56  ;;  %v3578_v56 = vld [vmem:[%s3726_s2 + $0x8] sm:$0xff] }
 0xe7e   :  { %v1636_v33 = vmul.f32 %v3023_v23, %v3496_v59 }
 0xedd   :  { %v1543_v10 = vpop.permute.xlu0 %1542 }
 0xede   :  { %v1639_v25 = vpop.permute.xlu1 %1638  ;;  %v1545_v26 = vmul.f32 %v3021_v21, %v1543_v10 }
 0xedf   :  { %v1641_v32 = vmul.f32 %v3023_v23, %v1639_v25  ;;  %v3074_v25 = vld [vmem:[%s3731_s4 + $0x18] sm:$0xff] }
 0xee0   :  { %1547 = vrot.lane.b32.xlu0 %v1545_v26, %s3085_s25  ;;  %v3075_v26 = vld [vmem:[%s3730_s5 + $0x10] sm:$0xff] }
 0xee1   :  { %1643 = vrot.lane.b32.xlu1 %v1641_v32, %s3085_s25  ;;  %v3076_v32 = vld [vmem:[%s3731_s4 + $0x10] sm:$0xff] }
 0xf52   :  { %v1548_v36 = vpop.permute.xlu0 %1547 }
 0xf53   :  { %v1644_v37 = vpop.permute.xlu1 %1643  ;;  %v3545_v38 = vadd.f32 %v1548_v36, %v1540_v24  ;;  %v3077_v24 = vld [vmem:[%s3730_s5 + $0x8] sm:$0xff]  ;;  %v3079_v36 = vld [vmem:[%s3731_s4] sm:$0xff] }
 0xf54   :  { %v3547_v40 = vadd.f32 %v1644_v37, %v1636_v33  ;;  %v3078_v33 = vld [vmem:[%s3731_s4 + $0x8] sm:$0xff]  ;;  %v3080_v37 = vld [vmem:[%s3730_s5] sm:$0xff] }
 0xf55   :  { %3024 = vtanh.f32 %v3545_v38 }
 0xf56   :  { %3026 = vtanh.f32 %v3547_v40 }
 0xf62   :  { %v3025_v41 = vpop.eup %3024 }
 0xf63   :  { %v3027_v42 = vpop.eup %3026  ;;  %1553 = vrot.lane.b32.xlu0 %v3025_v41, %s3084_s24 }
 0xf64   :  { %1649 = vrot.lane.b32.xlu1 %v3027_v42, %s3084_s24 }
 0xfd5   :  { %v1554_v48 = vpop.permute.xlu0 %1553 }
 0xfd6   :  { %v1650_v43 = vpop.permute.xlu1 %1649  ;;  %v1556_v44 = vmul.f32 %v3021_v21, %v1554_v48 }
 0xfd7   :  { %v1652_v52 = vmul.f32 %v3023_v23, %v1650_v43  ;;  %v3073_v23 = vld [vmem:[%s3730_s5 + $0x18] sm:$0xff] }
 0xfd8   :  { %1654 = vrot.lane.b32.xlu0 %v1556_v44, %s3085_s25 }
 0xfd9   :  { %1729 = vrot.lane.b32.xlu1 %v1652_v52, %s3085_s25 }
0x104a   :  { %v1655_v53 = vpop.permute.xlu0 %1654 }
0x104b   :  { %v1730_v45 = vpop.permute.xlu1 %1729  ;;  %2846 = vmatmul.mubr.msk.f32.vlgmr.msra.gmra.mxu0 %vm203_vm3, %v1655_v53 }
0x104c   :  { %2857 = vmatmul.mubr.msk.f32.vlgmr.msra.gmra.mxu1 %vm203_vm3, %v1730_v45  ;;  %2860 = vmatpush3.msra.mxu0 %v3560_v54 }
0x104d   :  { %2861 = vmatprep.subr.mxu0 %v3082_v0  ;;  %2867 = vmatprep.mubr.msk.f32.mxu0 %vm3083_vm2, %v3082_v0 }
0x104e   :  { %2862 = vmatpush3.msra.mxu0 %v3569_v55  ;;  %2871 = vmatpush3.msra.mxu1 %v3204_v27  ;;  %v3587_v27 = vld [vmem:[%s3726_s2] sm:$0xff] }
0x104f   :  { %2863 = vmatprep.subr.mxu0 %v3082_v0  ;;  %2872 = vmatprep.subr.mxu1 %v3082_v0 }
0x1050   :  { %2864 = vmatpush3.msra.mxu0 %v3578_v56  ;;  %2873 = vmatpush3.msra.mxu1 %v3215_v29 }
0x1051   :  { %2865 = vmatprep.subr.mxu0 %v3082_v0  ;;  %2874 = vmatprep.subr.mxu1 %v3082_v0 }
0x1052   :  { %2866 = vmatpush3.msra.mxu0 %v3587_v27  ;;  %2875 = vmatpush3.msra.mxu1 %v3229_v31 }
0x1053   :  { %2868 = vmatmul.mubr.msk.f32.vlgmr.msra.gmra.mxu0 %vm203_vm3, %v1730_v45  ;;  %2876 = vmatprep.subr.mxu1 %v3082_v0 }
0x1054   :  { %2877 = vmatpush3.msra.mxu1 %v3244_v34  ;;  %2878 = vmatprep.mubr.msk.f32.mxu1 %vm3083_vm2, %v3082_v0 }
0x1055   :  { %2881 = vmatprep.subr.mxu0 %v3082_v0  ;;  %2892 = vmatprep.subr.mxu1 %v3082_v0 }
0x1056   :  { %2882 = vmatpush3.msra.mxu0 %v3209_v28  ;;  %2889 = vmatprep.mubr.msk.f32.mxu0 %vm3083_vm2, %v3082_v0 }
0x1057   :  { %2883 = vmatprep.subr.mxu0 %v3082_v0 }
0x1058   :  { %2884 = vmatpush3.msra.mxu0 %v3222_v30 }
0x1059   :  { %2885 = vmatprep.subr.mxu0 %v3082_v0 }
0x105a   :  { %2886 = vmatpush3.msra.mxu0 %v3251_v35  ;;  %v3613_v35 = vld [vmem:[%s3729_s3] ss:$0 sm:$0xff] }
0x105b   :  { %2887 = vmatprep.subr.mxu0 %v3082_v0 }
0x105c   :  { %2888 = vmatpush3.msra.mxu0 %v3272_v39 }
0x105d   :  { %2903 = vmatprep.subr.mxu0 %v3082_v0 }
0x110b   :  { %v1724_v29 = vpop.f32.mrf.mxu0 }
0x110c   :  { %v1799_v31 = vpop.f32.mrf.mxu1 }
0x110d   :  { %v1800_v28 = vadd.f32 %v1799_v31, %v1724_v29  ;;  %v2847_v34 = vpop.f32.mrf.mxu0 }
0x110e   :  { %v2858_v57 = vpop.f32.mrf.mxu1 }
0x110f   :  { %v1803_v58 = vadd.f32 %v3327_v51, %v1800_v28 }
0x1111   :  { %3028 = vtanh.f32 %v1803_v58  ;;  %v2500_v46 = vmul.f32 -1.442695, %v1803_v58 }
0x1113   :  { %v1894_v59 = vpop.f32.mrf.mxu0 }
0x1114   :  { %v1898_v30 = vadd.f32 %v1894_v59, %v3322_v50 }
0x1115   :  { %v2869_v60 = vpop.f32.mrf.mxu0 }
0x1116   :  { %v1899_v39 = vadd.f32 %v3613_v35, %v1898_v30 }
0x1118   :  { %3030 = vtanh.f32 %v1899_v39  ;;  %v2502_v63 = vmul.f32 -1.442695, %v1899_v39 }
0x1119   :  { %3032 = vpow2.f32 %v2500_v46 }
0x111a   :  { %3034 = vpow2.f32 %v2502_v63 }
0x111e   :  { %v3029_v61 = vpop.eup %3028 }
0x111f   :  { %1813 = vrot.lane.b32.xlu0 %v3029_v61, %s3084_s24 }
0x1125   :  { %v3031_v62 = vpop.eup %3030 }
0x1126   :  { %1909 = vrot.lane.b32.xlu1 %v3031_v62, %s3084_s24  ;;  %v3033_v50 = vpop.eup %3032 }
0x1127   :  { %v1807_v2 = vadd.f32 1.0, %v3033_v50  ;;  %v3035_v3 = vpop.eup %3034 }
0x1128   :  { %v1903_v5 = vadd.f32 1.0, %v3035_v3 }
0x1129   :  { %3036 = vrcp.f32 %v1807_v2 }
0x112a   :  { %3038 = vrcp.f32 %v1903_v5 }
0x1136   :  { %v3037_v1 = vpop.eup %3036 }
0x1137   :  { %v3039_v7 = vpop.eup %3038  ;;  %v1811_v11 = vmul.f32 %v3037_v1, %v3545_v38 }
0x1138   :  { %v1907_v14 = vmul.f32 %v3039_v7, %v3547_v40 }
0x1191   :  { %v1814_v4 = vpop.permute.xlu0 %1813 }
0x1192   :  { %v1816_v6 = vmul.f32 %v3037_v1, %v1814_v4 }
0x1194   :  { %1818 = vrot.lane.b32.xlu0 %v1816_v6, %s3085_s25 }
0x1198   :  { %v1910_v8 = vpop.permute.xlu1 %1909 }
0x1199   :  { %v1912_v9 = vmul.f32 %v3039_v7, %v1910_v8 }
0x119b   :  { %1914 = vrot.lane.b32.xlu1 %v1912_v9, %s3085_s25 }
0x1206   :  { %v1819_v12 = vpop.permute.xlu0 %1818 }
0x1207   :  { %v3621_v13 = vadd.f32 %v1819_v12, %v1811_v11 }
0x1209   :  { %3040 = vtanh.f32 %v3621_v13 }
0x120d   :  { %v1915_v15 = vpop.permute.xlu1 %1914 }
0x120e   :  { %v3625_v16 = vadd.f32 %v1915_v15, %v1907_v14 }
0x1210   :  { %3042 = vtanh.f32 %v3625_v16 }
0x1216   :  { %v3041_v17 = vpop.eup %3040 }
0x1217   :  { %1824 = vrot.lane.b32.xlu0 %v3041_v17, %s3084_s24 }
0x121d   :  { %v3043_v18 = vpop.eup %3042 }
0x121e   :  { %1920 = vrot.lane.b32.xlu1 %v3043_v18, %s3084_s24 }
0x1289   :  { %v1825_v19 = vpop.permute.xlu0 %1824 }
0x128a   :  { %v1827_v47 = vmul.f32 %v3037_v1, %v1825_v19 }
0x128c   :  { %1925 = vrot.lane.b32.xlu0 %v1827_v47, %s3085_s25 }
0x1290   :  { %v1921_v20 = vpop.permute.xlu1 %1920 }
0x1291   :  { %v1923_v22 = vmul.f32 %v3039_v7, %v1921_v20 }
0x1293   :  { %2000 = vrot.lane.b32.xlu1 %v1923_v22, %s3085_s25 }
0x12fe   :  { %v1926_v21 = vpop.permute.xlu0 %1925 }
0x12ff   :  { %2879 = vmatmul.mubr.msk.f32.vlgmr.msra.gmra.mxu1 %vm203_vm3, %v1926_v21 }
0x1300   :  { %2893 = vmatpush3.msra.mxu1 %v3560_v54  ;;  %2900 = vmatprep.mubr.msk.f32.mxu1 %vm3083_vm2, %v3082_v0 }
0x1301   :  { %2894 = vmatprep.subr.mxu1 %v3082_v0 }
0x1302   :  { %2895 = vmatpush3.msra.mxu1 %v3569_v55 }
0x1303   :  { %2896 = vmatprep.subr.mxu1 %v3082_v0 }
0x1304   :  { %2897 = vmatpush3.msra.mxu1 %v3578_v56 }
0x1305   :  { %2898 = vmatprep.subr.mxu1 %v3082_v0  ;;  %v2001_v10 = vpop.permute.xlu1 %2000 }
0x1306   :  { %2899 = vmatpush3.msra.mxu1 %v3587_v27  ;;  %2890 = vmatmul.mubr.msk.f32.vlgmr.msra.gmra.mxu0 %vm203_vm3, %v2001_v10 }
0x1307   :  { %2901 = vmatmul.mubr.msk.f32.vlgmr.msra.gmra.mxu1 %vm203_vm3, %v2001_v10  ;;  %2914 = vmatprep.subr.mxu1 %v3082_v0 }
0x1308   :  { %2904 = vmatpush3.msra.mxu0 %v3073_v23  ;;  %2915 = vmatpush3.msra.mxu1 %v3074_v25  ;;  %v2373_v23 = vld [vmem:[%s3733_s7 + $0x18] sm:$0xff]  ;;  %v2372_v25 = vld [vmem:[%s3733_s7 + $0x10] sm:$0xff] }
0x1309   :  { %2905 = vmatprep.subr.mxu0 %v3082_v0  ;;  %2916 = vmatprep.subr.mxu1 %v3082_v0 }
0x130a   :  { %2906 = vmatpush3.msra.mxu0 %v3075_v26  ;;  %2917 = vmatpush3.msra.mxu1 %v3076_v32  ;;  %v2371_v26 = vld [vmem:[%s3733_s7 + $0x8] sm:$0xff]  ;;  %v2370_v32 = vld [vmem:[%s3733_s7] sm:$0xff] }
0x130b   :  { %2907 = vmatprep.subr.mxu0 %v3082_v0  ;;  %2918 = vmatprep.subr.mxu1 %v3082_v0 }
0x130c   :  { %2908 = vmatpush3.msra.mxu0 %v3077_v24  ;;  %2919 = vmatpush3.msra.mxu1 %v3078_v33  ;;  %v14_v33 = vstv %s3734_s8 }
0x130d   :  { %2909 = vmatprep.subr.mxu0 %v3082_v0  ;;  %2920 = vmatprep.subr.mxu1 %v3082_v0  ;;  %15 = vst [vmem:[#allocation2] sm:$0x1] %v14_v33 }
0x130e   :  { %2921 = vmatpush3.msra.mxu1 %v3079_v36  ;;  %2922 = vmatprep.mubr.msk.f32.mxu1 %vm3083_vm2, %v3082_v0 }
0x130f   :  { %2910 = vmatpush3.msra.mxu0 %v3080_v37  ;;  %2911 = vmatprep.mubr.msk.f32.mxu0 %vm3083_vm2, %v3082_v0 }
0x1310   :  { %2925 = vmatprep.subr.mxu0 %v3082_v0 }
0x13bf   :  { %v1995_v38 = vpop.f32.mrf.mxu1 }
0x13c1   :  { %v2880_v40 = vpop.f32.mrf.mxu1 }
0x13c2   :  { %v2511_v40 = vld [vmem:[#allocation2] ss:$0 sm:$0xff] }
0x13c6   :  { %v2070_v41 = vpop.f32.mrf.mxu0 }
0x13c7   :  { %v2071_v42 = vadd.f32 %v2070_v41, %v1995_v38  ;;  %v2165_v48 = vpop.f32.mrf.mxu1 }
0x13c8   :  { %v2169_v43 = vadd.f32 %v3320_v49, %v2165_v48  ;;  %v2891_v44 = vpop.f32.mrf.mxu0 }
0x13c9   :  { %v2074_v52 = vadd.f32 %v3327_v51, %v2071_v42  ;;  %v2902_v53 = vpop.f32.mrf.mxu1 }
0x13ca   :  { %v2170_v45 = vadd.f32 %v3613_v35, %v2169_v43 }
0x13cb   :  { %3044 = vtanh.f32 %v2074_v52  ;;  %v2505_v56 = vmul.f32 -1.442695, %v2074_v52 }
0x13cc   :  { %3046 = vtanh.f32 %v2170_v45  ;;  %v2507_v27 = vmul.f32 -1.442695, %v2170_v45 }
0x13cd   :  { %3048 = vpow2.f32 %v2505_v56 }
0x13ce   :  { %3050 = vpow2.f32 %v2507_v27 }
0x13d8   :  { %v3045_v54 = vpop.eup %3044 }
0x13d9   :  { %v3047_v55 = vpop.eup %3046  ;;  %2084 = vrot.lane.b32.xlu0 %v3045_v54, %s3084_s24 }
0x13da   :  { %2180 = vrot.lane.b32.xlu1 %v3047_v55, %s3084_s24  ;;  %v3049_v29 = vpop.eup %3048 }
0x13db   :  { %v3051_v49 = vpop.eup %3050  ;;  %v2078_v31 = vadd.f32 1.0, %v3049_v29 }
0x13dc   :  { %v2174_v28 = vadd.f32 1.0, %v3051_v49 }
0x13dd   :  { %3052 = vrcp.f32 %v2078_v31 }
0x13de   :  { %3054 = vrcp.f32 %v2174_v28 }
0x13ea   :  { %v3053_v51 = vpop.eup %3052 }
0x13eb   :  { %v3055_v57 = vpop.eup %3054  ;;  %v2082_v60 = vmul.f32 %v3053_v51, %v3621_v13  ;;  %v3081_v13 = vld [vmem:[%s3732_s6] ss:$0 sm:$0xff] }
0x13ec   :  { %v2178_v35 = vmul.f32 %v3055_v57, %v3625_v16 }
0x144b   :  { %v2085_v34 = vpop.permute.xlu0 %2084 }
0x144c   :  { %v2181_v58 = vpop.permute.xlu1 %2180  ;;  %v2087_v59 = vmul.f32 %v3053_v51, %v2085_v34 }
0x144d   :  { %v2183_v30 = vmul.f32 %v3055_v57, %v2181_v58 }
0x144e   :  { %2089 = vrot.lane.b32.xlu0 %v2087_v59, %s3085_s25 }
0x144f   :  { %2185 = vrot.lane.b32.xlu1 %v2183_v30, %s3085_s25 }
0x14c0   :  { %v2090_v39 = vpop.permute.xlu0 %2089 }
0x14c1   :  { %v2186_v61 = vpop.permute.xlu1 %2185  ;;  %v2092_v62 = vadd.f32 %v2090_v39, %v2082_v60 }
0x14c2   :  { %v2188_v46 = vadd.f32 %v2186_v61, %v2178_v35 }
0x14c3   :  { %3056 = vtanh.f32 %v2092_v62 }
0x14c4   :  { %3058 = vtanh.f32 %v2188_v46 }
0x14d0   :  { %v3057_v63 = vpop.eup %3056 }
0x14d1   :  { %v3059_v50 = vpop.eup %3058  ;;  %2095 = vrot.lane.b32.xlu0 %v3057_v63, %s3084_s24 }
0x14d2   :  { %2191 = vrot.lane.b32.xlu1 %v3059_v50, %s3084_s24 }
0x1543   :  { %v2096_v2 = vpop.permute.xlu0 %2095 }
0x1544   :  { %v2192_v3 = vpop.permute.xlu1 %2191  ;;  %v2098_v5 = vmul.f32 %v3053_v51, %v2096_v2 }
0x1545   :  { %v2194_v1 = vmul.f32 %v3055_v57, %v2192_v3 }
0x1546   :  { %2196 = vrot.lane.b32.xlu0 %v2098_v5, %s3085_s25 }
0x1547   :  { %2271 = vrot.lane.b32.xlu1 %v2194_v1, %s3085_s25 }
0x15b8   :  { %v2197_v4 = vpop.permute.xlu0 %2196 }
0x15b9   :  { %v2272_v6 = vpop.permute.xlu1 %2271  ;;  %2912 = vmatmul.mubr.msk.f32.vlgmr.msra.gmra.mxu0 %vm203_vm3, %v2197_v4 }
0x15ba   :  { %2923 = vmatmul.mubr.msk.f32.vlgmr.msra.gmra.mxu1 %vm203_vm3, %v2272_v6  ;;  %2933 = vmatprep.mubr.msk.f32.mxu0 %vm3083_vm2, %v3082_v0 }
0x15bb   :  { %2926 = vmatpush3.msra.mxu0 %v2373_v23 }
0x15bc   :  { %2927 = vmatprep.subr.mxu0 %v3082_v0 }
0x15bd   :  { %2928 = vmatpush3.msra.mxu0 %v2372_v25 }
0x15be   :  { %2929 = vmatprep.subr.mxu0 %v3082_v0 }
0x15bf   :  { %2930 = vmatpush3.msra.mxu0 %v2371_v26 }
0x15c0   :  { %2931 = vmatprep.subr.mxu0 %v3082_v0 }
0x15c1   :  { %2932 = vmatpush3.msra.mxu0 %v2370_v32 }
0x1679   :  { %v2266_v7 = vpop.f32.mrf.mxu0 }
0x167a   :  { %v2341_v8 = vpop.f32.mrf.mxu1 }
0x167b   :  { %v2342_v9 = vadd.f32 %v2341_v8, %v2266_v7  ;;  %v2913_v11 = vpop.f32.mrf.mxu0 }
0x167c   :  { %v2924_v12 = vpop.f32.mrf.mxu1 }
0x167d   :  { %v2345_v14 = vadd.f32 %v3081_v13, %v2342_v9 }
0x167f   :  { %3060 = vtanh.f32 %v2345_v14  ;;  %v2510_v16 = vmul.f32 -1.442695, %v2345_v14 }
0x1681   :  { %3062 = vpow2.f32 %v2510_v16 }
0x168c   :  { %v3061_v15 = vpop.eup %3060 }
0x168d   :  { %2355 = vrot.lane.b32.xlu0 %v3061_v15, %s3084_s24 }
0x168e   :  { %v3063_v17 = vpop.eup %3062 }
0x168f   :  { %v2349_v18 = vadd.f32 1.0, %v3063_v17 }
0x1691   :  { %3064 = vrcp.f32 %v2349_v18 }
0x169e   :  { %v3065_v19 = vpop.eup %3064 }
0x169f   :  { %v2353_v22 = vmul.f32 %v3065_v19, %v2092_v62 }
0x16ff   :  { %v2356_v47 = vpop.permute.xlu0 %2355 }
0x1700   :  { %v2358_v20 = vmul.f32 %v3065_v19, %v2356_v47 }
0x1702   :  { %2360 = vrot.lane.b32.xlu1 %v2358_v20, %s3085_s25 }
0x1774   :  { %v2361_v21 = vpop.permute.xlu1 %2360 }
0x1775   :  { %v2363_v10 = vadd.f32 %v2361_v21, %v2353_v22 }
0x1777   :  { %3066 = vtanh.f32 %v2363_v10 }
0x1784   :  { %v3067_v24 = vpop.eup %3066 }
0x1785   :  { %2366 = vrot.lane.b32.xlu0 %v3067_v24, %s3084_s24 }
0x17f7   :  { %v2367_v36 = vpop.permute.xlu0 %2366 }
0x17f8   :  { %v2369_v37 = vmul.f32 %v3065_v19, %v2367_v36 }
0x17fa   :  { %2382 = vrot.lane.b32.xlu1 %v2369_v37, %s3085_s25 }
0x186c   :  { %v2383_v38 = vpop.permute.xlu1 %2382 }
0x186d   :  { %2934 = vmatmul.mubr.msk.f32.vlgmr.msra.gmra.mxu0 %vm203_vm3, %v2383_v38 }
0x192d   :  { %v2452_v41 = vpop.f32.mrf.mxu0 }
0x192e   :  { %v2453_v0 = vadd.f32 %v2511_v40, %v2452_v41 }
0x192f   :  { %v2935_v42 = vpop.f32.mrf.mxu0 }
0x1930   :  { %2457 = vst.msk [vmem:[%s3735_s9] sm:$0xff] %vm2456_vm4, %v2453_v0 }

</bundles_post_ra>
